<compile_context>
chip_gen: v7x
topology: tpu7x:2x2x1
jax: 0.10.0
libtpu: 0.0.40
codegen_flags: <defaults>
</compile_context>

<pallas_src>
import functools

import jax
import jax.numpy as jnp
from jax.experimental import pallas as pl
from jax.experimental.pallas import tpu as pltpu


# ----------------------------- Pallas kernel ------------------------------- #

def _fused_conv_bn_kernel(*refs, n_phase, taps, out_hw, relu, has_residual):
    """(sum_t x_tap[t] @ w[t]) + bias [+ residual] [+ ReLU] for one batch element.

    refs = (*phase_refs, w_ref, b_ref, [r_ref], o_ref)
      phase_refs[p] : (Hp_p, Wp_p, Cin)    padded activation (phase view), f32
      w_ref         : (n_taps, Cin, Cout)  BN-scale-folded weights, bf16
      b_ref         : (1, Cout)            folded BN bias, f32
      r_ref         : (Ho, Wo, Cout)       optional residual, f32
      o_ref         : (Ho, Wo, Cout)       output, f32
    """
    x_refs = refs[:n_phase]
    w_ref = refs[n_phase]
    b_ref = refs[n_phase + 1]
    r_ref = refs[n_phase + 2] if has_residual else None
    o_ref = refs[-1]

    Ho, Wo = out_hw
    cin = x_refs[0].shape[-1]
    cout = w_ref.shape[-1]

    # Statically unrolled over the (<=9) filter taps: shifted-window loads from the
    # padded activation tile already resident in VMEM, bf16 MXU matmuls, f32 accum.
    acc = jnp.zeros((Ho * Wo, cout), jnp.float32)
    for t, (p, oh, ow) in enumerate(taps):
        xt = x_refs[p][pl.ds(oh, Ho), pl.ds(ow, Wo), :]            # (Ho, Wo, Cin)
        lhs = xt.reshape(Ho * Wo, cin).astype(jnp.bfloat16)
        acc = acc + jnp.dot(lhs, w_ref[t], preferred_element_type=jnp.float32)

    acc = acc + b_ref[...]                                         # folded BN bias
    if has_residual:
        acc = acc + r_ref[...].reshape(Ho * Wo, cout).astype(jnp.float32)
    if relu:
        acc = jnp.maximum(acc, 0.0)
    o_ref[...] = acc.reshape(Ho, Wo, cout).astype(o_ref.dtype)


# ------------------------------ conv wrapper -------------------------------- #

def conv_bn_act(x_nhwc, w_oihw, scale, bias, *, stride, padding, relu, residual=None):
    """Fused Conv2d(kxk, stride, padding, no bias) + folded BN [+ residual] [+ ReLU]."""
    N, H, W, C = x_nhwc.shape
    cout, cin, kh, kw = w_oihw.shape
    assert cin == C

    xp = x_nhwc
    if padding:
        xp = jnp.pad(xp, ((0, 0), (padding, padding), (padding, padding), (0, 0)))
    Hp, Wp = H + 2 * padding, W + 2 * padding
    Ho = (Hp - kh) // stride + 1
    Wo = (Wp - kw) // stride + 1

    # Map every filter tap (dh, dw) to an unstrided window of a "phase" view
    # xp[:, a::s, b::s, :].  For stride 1 there is a single phase (= xp itself),
    # so no extra slicing pass is performed.
    tap_keys = [(dh % stride, dw % stride, dh // stride, dw // stride)
                for dh in range(kh) for dw in range(kw)]
    used = []
    for a, b, _, _ in tap_keys:
        if (a, b) not in used:
            used.append((a, b))
    phase_idx = {k: i for i, k in enumerate(used)}
    if stride == 1:
        phase_arrays = [xp]
    else:
        phase_arrays = [xp[:, a::stride, b::stride, :] for (a, b) in used]
    taps = tuple((phase_idx[(a, b)], oh, ow) for (a, b, oh, ow) in tap_keys)
    n_phase = len(phase_arrays)

    # Fold BN scale into the weights (host-side, one-time) and cast to bf16 for the
    # MXU; only the bias add remains in the kernel epilogue.
    wf = (w_oihw * scale[:, None, None, None]).transpose(2, 3, 1, 0)
    wf = wf.reshape(kh * kw, cin, cout).astype(jnp.bfloat16)
    b2 = bias.reshape(1, cout).astype(jnp.float32)

    args = list(phase_arrays) + [wf, b2]
    if residual is not None:
        args.append(residual)

    kernel = functools.partial(
        _fused_conv_bn_kernel, n_phase=n_phase, taps=taps, out_hw=(Ho, Wo),
        relu=relu, has_residual=residual is not None)

    def build_and_run(const_mode):
        extra = {} if const_mode is None else {"pipeline_mode": const_mode}
        in_specs = []
        for ph in phase_arrays:
            _, ph_h, ph_w, _ = ph.shape
            in_specs.append(
                pl.BlockSpec((None, ph_h, ph_w, C), lambda n: (n, 0, 0, 0)))
        # Grid-invariant operands (weights, bias): constant index_map; optionally
        # single-buffered to halve their VMEM footprint.
        in_specs.append(
            pl.BlockSpec((kh * kw, cin, cout), lambda n: (0, 0, 0), **extra))
        in_specs.append(pl.BlockSpec((1, cout), lambda n: (0, 0), **extra))
        if residual is not None:
            in_specs.append(
                pl.BlockSpec((None, Ho, Wo, cout), lambda n: (n, 0, 0, 0)))
        return pl.pallas_call(
            kernel,
            out_shape=jax.ShapeDtypeStruct((N, Ho, Wo, cout), x_nhwc.dtype),
            grid=(N,),
            in_specs=in_specs,
            out_specs=pl.BlockSpec((None, Ho, Wo, cout), lambda n: (n, 0, 0, 0)),
            compiler_params=pltpu.CompilerParams(
                dimension_semantics=("parallel",)),
        )(*args)

    if hasattr(pl, "Buffered"):
        try:
            return build_and_run(pl.Buffered(1))
        except Exception:   # older Pallas without pipeline_mode / Buffered(1) support
            pass
    return build_and_run(None)


# --------------------------- block / stage glue ----------------------------- #

def fold_bn(p, eps=1e-5):
    scale = p['gamma'] / jnp.sqrt(p['var'] + eps)
    bias = p['beta'] - p['mean'] * scale
    return scale, bias


def basic_block_forward(x_nhwc, bp, stride, shortcut):
    # branch2a: conv3x3(stride) + BN + ReLU
    s_a, b_a = fold_bn(bp['branch2a'])
    out = conv_bn_act(x_nhwc, bp['branch2a']['w'], s_a, b_a,
                      stride=stride, padding=1, relu=True)

    # shortcut path: identity, or 1x1(stride) conv + BN projection (variant 'b')
    if shortcut:
        short = x_nhwc
    else:
        s_s, b_s = fold_bn(bp['short'])
        short = conv_bn_act(x_nhwc, bp['short']['w'], s_s, b_s,
                            stride=stride, padding=0, relu=False)

    # branch2b: conv3x3(1) + BN, fused residual add + ReLU
    s_b, b_b = fold_bn(bp['branch2b'])
    return conv_bn_act(out, bp['branch2b']['w'], s_b, b_b,
                       stride=1, padding=1, relu=True, residual=short)


def blocks_forward(x_nchw, params, stage_num):
    x = jnp.transpose(x_nchw, (0, 2, 3, 1))          # NCHW -> NHWC
    for i, bp in enumerate(params):
        stride = 2 if (i == 0 and stage_num != 2) else 1
        shortcut = (i != 0)
        x = basic_block_forward(x, bp, stride, shortcut)
    return jnp.transpose(x, (0, 3, 1, 2))            # NHWC -> NCHW


# ----------------------- deterministic parameter init ---------------------- #

def make_conv_bn_params(key, cin, cout, k):
    k1, k2, k3, k4, k5 = jax.random.split(key, 5)
    return dict(
        w=0.1 * jax.random.normal(k1, (cout, cin, k, k), jnp.float32),
        gamma=1.0 + 0.1 * jax.random.normal(k2, (cout,), jnp.float32),
        beta=0.1 * jax.random.normal(k3, (cout,), jnp.float32),
        mean=0.1 * jax.random.normal(k4, (cout,), jnp.float32),
        var=1.0 + 0.1 * jnp.abs(jax.random.normal(k5, (cout,), jnp.float32)),
    )


def make_blocks_params(key, ch_in, ch_out, count, stage_num):
    params = []
    ch = ch_in
    for i in range(count):
        shortcut = (i != 0)
        key, k1, k2, k3 = jax.random.split(key, 4)
        bp = {
            'branch2a': make_conv_bn_params(k1, ch, ch_out, 3),
            'branch2b': make_conv_bn_params(k2, ch_out, ch_out, 3),
        }
        if not shortcut:
            bp['short'] = make_conv_bn_params(k3, ch, ch_out, 1)
        params.append(bp)
        if i == 0:
            ch = ch_out * 1  # BasicBlock.expansion == 1
    return params


# ------------------------------ JAX reference ------------------------------ #

def conv_bn_ref(x, p, stride, pad, relu):
    y = jax.lax.conv_general_dilated(
        x, p['w'], (stride, stride), [(pad, pad), (pad, pad)],
        dimension_numbers=('NCHW', 'OIHW', 'NCHW'))
    scale, bias = fold_bn(p)
    y = y * scale[None, :, None, None] + bias[None, :, None, None]
    if relu:
        y = jnp.maximum(y, 0.0)
    return y


def blocks_ref(x, params, stage_num):
    out = x
    for i, bp in enumerate(params):
        stride = 2 if (i == 0 and stage_num != 2) else 1
        shortcut = (i != 0)
        y = conv_bn_ref(out, bp['branch2a'], stride, 1, True)
        y = conv_bn_ref(y, bp['branch2b'], 1, 1, False)
        short = out if shortcut else conv_bn_ref(out, bp['short'], stride, 0, False)
        out = jnp.maximum(y + short, 0.0)
    return out


# ---------------------------------- main ----------------------------------- #

if __name__ == "__main__":
    key = jax.random.PRNGKey(0)
    ch_in, ch_out, count, stage_num = 4, 8, 2, 3   # first block: stride 2, projection shortcut
    kx, kp = jax.random.split(key)
    x = jax.random.normal(kx, (2, ch_in, 16, 16), jnp.float32)   # NCHW, like PyTorch

    params = make_blocks_params(kp, ch_in, ch_out, count, stage_num)

    out = blocks_forward(x, params, stage_num)
    out = jax.block_until_ready(out)

    ref = jax.block_until_ready(blocks_ref(x, params, stage_num))
    assert out.shape == ref.shape == (2, ch_out, 8, 8), (out.shape, ref.shape)
    # bf16 matmul operands (f32 accumulation) -> slightly looser tolerance vs f32 ref.
    max_err = float(jnp.max(jnp.abs(out - ref)))
    assert jnp.allclose(out, ref, rtol=2e-2, atol=2e-2), max_err

    print("KERNEL_OK")
</pallas_src>

<mosaic_0001>
module attributes {stable_mosaic.version = 11 : i64} {
  func.func @_fused_conv_bn_kernel(%arg0: i32, %arg1: memref<1x9x9x4xf32, #tpu.memory_space<vmem>>, %arg2: memref<1x9x9x4xf32, #tpu.memory_space<vmem>>, %arg3: memref<1x9x9x4xf32, #tpu.memory_space<vmem>>, %arg4: memref<1x9x9x4xf32, #tpu.memory_space<vmem>>, %arg5: memref<9x4x8xbf16, #tpu.memory_space<vmem>>, %arg6: memref<1x8xf32, #tpu.memory_space<vmem>>, %arg7: memref<1x8x8x8xf32, #tpu.memory_space<vmem>>) attributes {dimension_semantics = [#tpu.dimension_semantics<parallel>], iteration_bounds = array<i64: 2>, scalar_prefetch = 0 : i64, scratch_operands = 0 : i64, tpu.core_type = #tpu.core_type<tc>, window_params = [{transform_indices = @transform_0, window_bounds = array<i64: 1, 9, 9, 4>}, {transform_indices = @transform_1, window_bounds = array<i64: 1, 9, 9, 4>}, {transform_indices = @transform_2, window_bounds = array<i64: 1, 9, 9, 4>}, {transform_indices = @transform_3, window_bounds = array<i64: 1, 9, 9, 4>}, {pipeline_mode = #tpu.pipeline_mode<synchronous>, transform_indices = @transform_4, window_bounds = array<i64: 9, 4, 8>}, {pipeline_mode = #tpu.pipeline_mode<synchronous>, transform_indices = @transform_5, window_bounds = array<i64: 1, 8>}, {transform_indices = @transform_6, window_bounds = array<i64: 1, 8, 8, 8>}]} {
    %cst = arith.constant 0.000000e+00 : f32
    %0 = vector.broadcast %cst : f32 to vector<64x8xf32>
    %c0 = arith.constant 0 : index
    %c0_0 = arith.constant 0 : index
    %c0_1 = arith.constant 0 : index
    %c0_2 = arith.constant 0 : index
    %1 = vector.load %arg1[%c0, %c0_0, %c0_1, %c0_2] : memref<1x9x9x4xf32, #tpu.memory_space<vmem>>, vector<1x8x8x4xf32>
    %2 = vector.shape_cast %1 : vector<1x8x8x4xf32> to vector<8x8x4xf32>
    %3 = vector.shape_cast %2 : vector<8x8x4xf32> to vector<64x4xf32>
    %4 = arith.truncf %3 : vector<64x4xf32> to vector<64x4xbf16>
    %c0_3 = arith.constant 0 : index
    %c0_4 = arith.constant 0 : index
    %c0_5 = arith.constant 0 : index
    %5 = vector.load %arg5[%c0_3, %c0_4, %c0_5] : memref<9x4x8xbf16, #tpu.memory_space<vmem>>, vector<1x4x8xbf16>
    %6 = vector.shape_cast %5 : vector<1x4x8xbf16> to vector<4x8xbf16>
    %cst_6 = arith.constant dense<0.000000e+00> : vector<64x8xf32>
    %7 = tpu.matmul %4, %6, %cst_6 {dimension_numbers = #tpu.dot_dimension_numbers<[1], [0], [0], [1], [0, 0, 1, 1], [], []>} : vector<64x4xbf16>, vector<4x8xbf16>, vector<64x8xf32> -> vector<64x8xf32>
    %8 = arith.addf %0, %7 : vector<64x8xf32>
    %c0_7 = arith.constant 0 : index
    %c0_8 = arith.constant 0 : index
    %c0_9 = arith.constant 0 : index
    %c0_10 = arith.constant 0 : index
    %9 = vector.load %arg2[%c0_7, %c0_8, %c0_9, %c0_10] : memref<1x9x9x4xf32, #tpu.memory_space<vmem>>, vector<1x8x8x4xf32>
    %10 = vector.shape_cast %9 : vector<1x8x8x4xf32> to vector<8x8x4xf32>
    %11 = vector.shape_cast %10 : vector<8x8x4xf32> to vector<64x4xf32>
    %12 = arith.truncf %11 : vector<64x4xf32> to vector<64x4xbf16>
    %c1 = arith.constant 1 : index
    %c0_11 = arith.constant 0 : index
    %c0_12 = arith.constant 0 : index
    %13 = vector.load %arg5[%c1, %c0_11, %c0_12] : memref<9x4x8xbf16, #tpu.memory_space<vmem>>, vector<1x4x8xbf16>
    %14 = vector.shape_cast %13 : vector<1x4x8xbf16> to vector<4x8xbf16>
    %cst_13 = arith.constant dense<0.000000e+00> : vector<64x8xf32>
    %15 = tpu.matmul %12, %14, %cst_13 {dimension_numbers = #tpu.dot_dimension_numbers<[1], [0], [0], [1], [0, 0, 1, 1], [], []>} : vector<64x4xbf16>, vector<4x8xbf16>, vector<64x8xf32> -> vector<64x8xf32>
    %16 = arith.addf %8, %15 : vector<64x8xf32>
    %c0_14 = arith.constant 0 : index
    %c0_15 = arith.constant 0 : index
    %c1_16 = arith.constant 1 : index
    %c0_17 = arith.constant 0 : index
    %17 = vector.load %arg1[%c0_14, %c0_15, %c1_16, %c0_17] : memref<1x9x9x4xf32, #tpu.memory_space<vmem>>, vector<1x8x8x4xf32>
    %18 = vector.shape_cast %17 : vector<1x8x8x4xf32> to vector<8x8x4xf32>
    %19 = vector.shape_cast %18 : vector<8x8x4xf32> to vector<64x4xf32>
    %20 = arith.truncf %19 : vector<64x4xf32> to vector<64x4xbf16>
    %c2 = arith.constant 2 : index
    %c0_18 = arith.constant 0 : index
    %c0_19 = arith.constant 0 : index
    %21 = vector.load %arg5[%c2, %c0_18, %c0_19] : memref<9x4x8xbf16, #tpu.memory_space<vmem>>, vector<1x4x8xbf16>
    %22 = vector.shape_cast %21 : vector<1x4x8xbf16> to vector<4x8xbf16>
    %cst_20 = arith.constant dense<0.000000e+00> : vector<64x8xf32>
    %23 = tpu.matmul %20, %22, %cst_20 {dimension_numbers = #tpu.dot_dimension_numbers<[1], [0], [0], [1], [0, 0, 1, 1], [], []>} : vector<64x4xbf16>, vector<4x8xbf16>, vector<64x8xf32> -> vector<64x8xf32>
    %24 = arith.addf %16, %23 : vector<64x8xf32>
    %c0_21 = arith.constant 0 : index
    %c0_22 = arith.constant 0 : index
    %c0_23 = arith.constant 0 : index
    %c0_24 = arith.constant 0 : index
    %25 = vector.load %arg3[%c0_21, %c0_22, %c0_23, %c0_24] : memref<1x9x9x4xf32, #tpu.memory_space<vmem>>, vector<1x8x8x4xf32>
    %26 = vector.shape_cast %25 : vector<1x8x8x4xf32> to vector<8x8x4xf32>
    %27 = vector.shape_cast %26 : vector<8x8x4xf32> to vector<64x4xf32>
    %28 = arith.truncf %27 : vector<64x4xf32> to vector<64x4xbf16>
    %c3 = arith.constant 3 : index
    %c0_25 = arith.constant 0 : index
    %c0_26 = arith.constant 0 : index
    %29 = vector.load %arg5[%c3, %c0_25, %c0_26] : memref<9x4x8xbf16, #tpu.memory_space<vmem>>, vector<1x4x8xbf16>
    %30 = vector.shape_cast %29 : vector<1x4x8xbf16> to vector<4x8xbf16>
    %cst_27 = arith.constant dense<0.000000e+00> : vector<64x8xf32>
    %31 = tpu.matmul %28, %30, %cst_27 {dimension_numbers = #tpu.dot_dimension_numbers<[1], [0], [0], [1], [0, 0, 1, 1], [], []>} : vector<64x4xbf16>, vector<4x8xbf16>, vector<64x8xf32> -> vector<64x8xf32>
    %32 = arith.addf %24, %31 : vector<64x8xf32>
    %c0_28 = arith.constant 0 : index
    %c0_29 = arith.constant 0 : index
    %c0_30 = arith.constant 0 : index
    %c0_31 = arith.constant 0 : index
    %33 = vector.load %arg4[%c0_28, %c0_29, %c0_30, %c0_31] : memref<1x9x9x4xf32, #tpu.memory_space<vmem>>, vector<1x8x8x4xf32>
    %34 = vector.shape_cast %33 : vector<1x8x8x4xf32> to vector<8x8x4xf32>
    %35 = vector.shape_cast %34 : vector<8x8x4xf32> to vector<64x4xf32>
    %36 = arith.truncf %35 : vector<64x4xf32> to vector<64x4xbf16>
    %c4 = arith.constant 4 : index
    %c0_32 = arith.constant 0 : index
    %c0_33 = arith.constant 0 : index
    %37 = vector.load %arg5[%c4, %c0_32, %c0_33] : memref<9x4x8xbf16, #tpu.memory_space<vmem>>, vector<1x4x8xbf16>
    %38 = vector.shape_cast %37 : vector<1x4x8xbf16> to vector<4x8xbf16>
    %cst_34 = arith.constant dense<0.000000e+00> : vector<64x8xf32>
    %39 = tpu.matmul %36, %38, %cst_34 {dimension_numbers = #tpu.dot_dimension_numbers<[1], [0], [0], [1], [0, 0, 1, 1], [], []>} : vector<64x4xbf16>, vector<4x8xbf16>, vector<64x8xf32> -> vector<64x8xf32>
    %40 = arith.addf %32, %39 : vector<64x8xf32>
    %c0_35 = arith.constant 0 : index
    %c0_36 = arith.constant 0 : index
    %c1_37 = arith.constant 1 : index
    %c0_38 = arith.constant 0 : index
    %41 = vector.load %arg3[%c0_35, %c0_36, %c1_37, %c0_38] : memref<1x9x9x4xf32, #tpu.memory_space<vmem>>, vector<1x8x8x4xf32>
    %42 = vector.shape_cast %41 : vector<1x8x8x4xf32> to vector<8x8x4xf32>
    %43 = vector.shape_cast %42 : vector<8x8x4xf32> to vector<64x4xf32>
    %44 = arith.truncf %43 : vector<64x4xf32> to vector<64x4xbf16>
    %c5 = arith.constant 5 : index
    %c0_39 = arith.constant 0 : index
    %c0_40 = arith.constant 0 : index
    %45 = vector.load %arg5[%c5, %c0_39, %c0_40] : memref<9x4x8xbf16, #tpu.memory_space<vmem>>, vector<1x4x8xbf16>
    %46 = vector.shape_cast %45 : vector<1x4x8xbf16> to vector<4x8xbf16>
    %cst_41 = arith.constant dense<0.000000e+00> : vector<64x8xf32>
    %47 = tpu.matmul %44, %46, %cst_41 {dimension_numbers = #tpu.dot_dimension_numbers<[1], [0], [0], [1], [0, 0, 1, 1], [], []>} : vector<64x4xbf16>, vector<4x8xbf16>, vector<64x8xf32> -> vector<64x8xf32>
    %48 = arith.addf %40, %47 : vector<64x8xf32>
    %c0_42 = arith.constant 0 : index
    %c1_43 = arith.constant 1 : index
    %c0_44 = arith.constant 0 : index
    %c0_45 = arith.constant 0 : index
    %49 = vector.load %arg1[%c0_42, %c1_43, %c0_44, %c0_45] : memref<1x9x9x4xf32, #tpu.memory_space<vmem>>, vector<1x8x8x4xf32>
    %50 = vector.shape_cast %49 : vector<1x8x8x4xf32> to vector<8x8x4xf32>
    %51 = vector.shape_cast %50 : vector<8x8x4xf32> to vector<64x4xf32>
    %52 = arith.truncf %51 : vector<64x4xf32> to vector<64x4xbf16>
    %c6 = arith.constant 6 : index
    %c0_46 = arith.constant 0 : index
    %c0_47 = arith.constant 0 : index
    %53 = vector.load %arg5[%c6, %c0_46, %c0_47] : memref<9x4x8xbf16, #tpu.memory_space<vmem>>, vector<1x4x8xbf16>
    %54 = vector.shape_cast %53 : vector<1x4x8xbf16> to vector<4x8xbf16>
    %cst_48 = arith.constant dense<0.000000e+00> : vector<64x8xf32>
    %55 = tpu.matmul %52, %54, %cst_48 {dimension_numbers = #tpu.dot_dimension_numbers<[1], [0], [0], [1], [0, 0, 1, 1], [], []>} : vector<64x4xbf16>, vector<4x8xbf16>, vector<64x8xf32> -> vector<64x8xf32>
    %56 = arith.addf %48, %55 : vector<64x8xf32>
    %c0_49 = arith.constant 0 : index
    %c1_50 = arith.constant 1 : index
    %c0_51 = arith.constant 0 : index
    %c0_52 = arith.constant 0 : index
    %57 = vector.load %arg2[%c0_49, %c1_50, %c0_51, %c0_52] : memref<1x9x9x4xf32, #tpu.memory_space<vmem>>, vector<1x8x8x4xf32>
    %58 = vector.shape_cast %57 : vector<1x8x8x4xf32> to vector<8x8x4xf32>
    %59 = vector.shape_cast %58 : vector<8x8x4xf32> to vector<64x4xf32>
    %60 = arith.truncf %59 : vector<64x4xf32> to vector<64x4xbf16>
    %c7 = arith.constant 7 : index
    %c0_53 = arith.constant 0 : index
    %c0_54 = arith.constant 0 : index
    %61 = vector.load %arg5[%c7, %c0_53, %c0_54] : memref<9x4x8xbf16, #tpu.memory_space<vmem>>, vector<1x4x8xbf16>
    %62 = vector.shape_cast %61 : vector<1x4x8xbf16> to vector<4x8xbf16>
    %cst_55 = arith.constant dense<0.000000e+00> : vector<64x8xf32>
    %63 = tpu.matmul %60, %62, %cst_55 {dimension_numbers = #tpu.dot_dimension_numbers<[1], [0], [0], [1], [0, 0, 1, 1], [], []>} : vector<64x4xbf16>, vector<4x8xbf16>, vector<64x8xf32> -> vector<64x8xf32>
    %64 = arith.addf %56, %63 : vector<64x8xf32>
    %c0_56 = arith.constant 0 : index
    %c1_57 = arith.constant 1 : index
    %c1_58 = arith.constant 1 : index
    %c0_59 = arith.constant 0 : index
    %65 = vector.load %arg1[%c0_56, %c1_57, %c1_58, %c0_59] : memref<1x9x9x4xf32, #tpu.memory_space<vmem>>, vector<1x8x8x4xf32>
    %66 = vector.shape_cast %65 : vector<1x8x8x4xf32> to vector<8x8x4xf32>
    %67 = vector.shape_cast %66 : vector<8x8x4xf32> to vector<64x4xf32>
    %68 = arith.truncf %67 : vector<64x4xf32> to vector<64x4xbf16>
    %c8 = arith.constant 8 : index
    %c0_60 = arith.constant 0 : index
    %c0_61 = arith.constant 0 : index
    %69 = vector.load %arg5[%c8, %c0_60, %c0_61] : memref<9x4x8xbf16, #tpu.memory_space<vmem>>, vector<1x4x8xbf16>
    %70 = vector.shape_cast %69 : vector<1x4x8xbf16> to vector<4x8xbf16>
    %cst_62 = arith.constant dense<0.000000e+00> : vector<64x8xf32>
    %71 = tpu.matmul %68, %70, %cst_62 {dimension_numbers = #tpu.dot_dimension_numbers<[1], [0], [0], [1], [0, 0, 1, 1], [], []>} : vector<64x4xbf16>, vector<4x8xbf16>, vector<64x8xf32> -> vector<64x8xf32>
    %72 = arith.addf %64, %71 : vector<64x8xf32>
    %c0_63 = arith.constant 0 : index
    %c0_64 = arith.constant 0 : index
    %73 = vector.load %arg6[%c0_63, %c0_64] : memref<1x8xf32, #tpu.memory_space<vmem>>, vector<1x8xf32>
    %74 = vector.broadcast %73 : vector<1x8xf32> to vector<64x8xf32>
    %75 = arith.addf %72, %74 : vector<64x8xf32>
    %cst_65 = arith.constant 0.000000e+00 : f32
    %76 = vector.broadcast %cst_65 : f32 to vector<64x8xf32>
    %77 = arith.maximumf %75, %76 : vector<64x8xf32>
    %78 = vector.shape_cast %77 : vector<64x8xf32> to vector<8x8x8xf32>
    %c0_66 = arith.constant 0 : index
    %c0_67 = arith.constant 0 : index
    %c0_68 = arith.constant 0 : index
    %c0_69 = arith.constant 0 : index
    %79 = vector.load %arg7[%c0_66, %c0_67, %c0_68, %c0_69] : memref<1x8x8x8xf32, #tpu.memory_space<vmem>>, vector<1x8x8x8xf32>
    %80 = vector.shape_cast %79 : vector<1x8x8x8xf32> to vector<8x8x8xf32>
    %81 = vector.shape_cast %78 : vector<8x8x8xf32> to vector<1x8x8x8xf32>
    tpu.vector_store %arg7[%c0_66, %c0_67, %c0_68, %c0_69], %81 {strides = array<i32>} : memref<1x8x8x8xf32, #tpu.memory_space<vmem>>, vector<1x8x8x8xf32>,
    return
  }
  func.func @transform_0(%arg0: i32) -> (i32, i32, i32, i32) {
    %c0_i32 = arith.constant 0 : i32
    %c0_i32_0 = arith.constant 0 : i32
    %c0_i32_1 = arith.constant 0 : i32
    %c0_i32_2 = arith.constant 0 : i32
    return %arg0, %c0_i32, %c0_i32_0, %c0_i32_1 : i32, i32, i32, i32
  }
  func.func @transform_1(%arg0: i32) -> (i32, i32, i32, i32) {
    %c0_i32 = arith.constant 0 : i32
    %c0_i32_0 = arith.constant 0 : i32
    %c0_i32_1 = arith.constant 0 : i32
    %c0_i32_2 = arith.constant 0 : i32
    return %arg0, %c0_i32, %c0_i32_0, %c0_i32_1 : i32, i32, i32, i32
  }
  func.func @transform_2(%arg0: i32) -> (i32, i32, i32, i32) {
    %c0_i32 = arith.constant 0 : i32
    %c0_i32_0 = arith.constant 0 : i32
    %c0_i32_1 = arith.constant 0 : i32
    %c0_i32_2 = arith.constant 0 : i32
    return %arg0, %c0_i32, %c0_i32_0, %c0_i32_1 : i32, i32, i32, i32
  }
  func.func @transform_3(%arg0: i32) -> (i32, i32, i32, i32) {
    %c0_i32 = arith.constant 0 : i32
    %c0_i32_0 = arith.constant 0 : i32
    %c0_i32_1 = arith.constant 0 : i32
    %c0_i32_2 = arith.constant 0 : i32
    return %arg0, %c0_i32, %c0_i32_0, %c0_i32_1 : i32, i32, i32, i32
  }
  func.func @transform_4(%arg0: i32) -> (i32, i32, i32) {
    %c0_i32 = arith.constant 0 : i32
    %c0_i32_0 = arith.constant 0 : i32
    %c0_i32_1 = arith.constant 0 : i32
    %c0_i32_2 = arith.constant 0 : i32
    return %c0_i32, %c0_i32_0, %c0_i32_1 : i32, i32, i32
  }
  func.func @transform_5(%arg0: i32) -> (i32, i32) {
    %c0_i32 = arith.constant 0 : i32
    %c0_i32_0 = arith.constant 0 : i32
    %c0_i32_1 = arith.constant 0 : i32
    return %c0_i32, %c0_i32_0 : i32, i32
  }
  func.func @transform_6(%arg0: i32) -> (i32, i32, i32, i32) {
    %c0_i32 = arith.constant 0 : i32
    %c0_i32_0 = arith.constant 0 : i32
    %c0_i32_1 = arith.constant 0 : i32
    %c0_i32_2 = arith.constant 0 : i32
    return %arg0, %c0_i32, %c0_i32_0, %c0_i32_1 : i32, i32, i32, i32
  }
}

module attributes {stable_mosaic.version = 11 : i64} {
  func.func @_fused_conv_bn_kernel(%arg0: i32, %arg1: memref<1x9x9x4xf32, #tpu.memory_space<vmem>>, %arg2: memref<1x9x9x4xf32, #tpu.memory_space<vmem>>, %arg3: memref<1x9x9x4xf32, #tpu.memory_space<vmem>>, %arg4: memref<1x9x9x4xf32, #tpu.memory_space<vmem>>, %arg5: memref<9x4x8xbf16, #tpu.memory_space<vmem>>, %arg6: memref<1x8xf32, #tpu.memory_space<vmem>>, %arg7: memref<1x8x8x8xf32, #tpu.memory_space<vmem>>) attributes {dimension_semantics = [#tpu.dimension_semantics<parallel>], iteration_bounds = array<i64: 2>, scalar_prefetch = 0 : i64, scratch_operands = 0 : i64, tpu.core_type = #tpu.core_type<tc>, window_params = [{transform_indices = @transform_0, window_bounds = array<i64: 1, 9, 9, 4>}, {transform_indices = @transform_1, window_bounds = array<i64: 1, 9, 9, 4>}, {transform_indices = @transform_2, window_bounds = array<i64: 1, 9, 9, 4>}, {transform_indices = @transform_3, window_bounds = array<i64: 1, 9, 9, 4>}, {pipeline_mode = #tpu.pipeline_mode<synchronous>, transform_indices = @transform_4, window_bounds = array<i64: 9, 4, 8>}, {pipeline_mode = #tpu.pipeline_mode<synchronous>, transform_indices = @transform_5, window_bounds = array<i64: 1, 8>}, {transform_indices = @transform_6, window_bounds = array<i64: 1, 8, 8, 8>}]} {
    %cst = arith.constant 0.000000e+00 : f32
    %0 = vector.broadcast %cst : f32 to vector<64x8xf32>
    %c0 = arith.constant 0 : index
    %c0_0 = arith.constant 0 : index
    %c0_1 = arith.constant 0 : index
    %c0_2 = arith.constant 0 : index
    %1 = vector.load %arg1[%c0, %c0_0, %c0_1, %c0_2] : memref<1x9x9x4xf32, #tpu.memory_space<vmem>>, vector<1x8x8x4xf32>
    %2 = vector.shape_cast %1 : vector<1x8x8x4xf32> to vector<8x8x4xf32>
    %3 = vector.shape_cast %2 : vector<8x8x4xf32> to vector<64x4xf32>
    %4 = arith.truncf %3 : vector<64x4xf32> to vector<64x4xbf16>
    %c0_3 = arith.constant 0 : index
    %c0_4 = arith.constant 0 : index
    %c0_5 = arith.constant 0 : index
    %5 = vector.load %arg5[%c0_3, %c0_4, %c0_5] : memref<9x4x8xbf16, #tpu.memory_space<vmem>>, vector<1x4x8xbf16>
    %6 = vector.shape_cast %5 : vector<1x4x8xbf16> to vector<4x8xbf16>
    %cst_6 = arith.constant dense<0.000000e+00> : vector<64x8xf32>
    %7 = tpu.matmul %4, %6, %cst_6 {dimension_numbers = #tpu.dot_dimension_numbers<[1], [0], [0], [1], [0, 0, 1, 1], [], []>} : vector<64x4xbf16>, vector<4x8xbf16>, vector<64x8xf32> -> vector<64x8xf32>
    %8 = arith.addf %0, %7 : vector<64x8xf32>
    %c0_7 = arith.constant 0 : index
    %c0_8 = arith.constant 0 : index
    %c0_9 = arith.constant 0 : index
    %c0_10 = arith.constant 0 : index
    %9 = vector.load %arg2[%c0_7, %c0_8, %c0_9, %c0_10] : memref<1x9x9x4xf32, #tpu.memory_space<vmem>>, vector<1x8x8x4xf32>
    %10 = vector.shape_cast %9 : vector<1x8x8x4xf32> to vector<8x8x4xf32>
    %11 = vector.shape_cast %10 : vector<8x8x4xf32> to vector<64x4xf32>
    %12 = arith.truncf %11 : vector<64x4xf32> to vector<64x4xbf16>
    %c1 = arith.constant 1 : index
    %c0_11 = arith.constant 0 : index
    %c0_12 = arith.constant 0 : index
    %13 = vector.load %arg5[%c1, %c0_11, %c0_12] : memref<9x4x8xbf16, #tpu.memory_space<vmem>>, vector<1x4x8xbf16>
    %14 = vector.shape_cast %13 : vector<1x4x8xbf16> to vector<4x8xbf16>
    %cst_13 = arith.constant dense<0.000000e+00> : vector<64x8xf32>
    %15 = tpu.matmul %12, %14, %cst_13 {dimension_numbers = #tpu.dot_dimension_numbers<[1], [0], [0], [1], [0, 0, 1, 1], [], []>} : vector<64x4xbf16>, vector<4x8xbf16>, vector<64x8xf32> -> vector<64x8xf32>
    %16 = arith.addf %8, %15 : vector<64x8xf32>
    %c0_14 = arith.constant 0 : index
    %c0_15 = arith.constant 0 : index
    %c1_16 = arith.constant 1 : index
    %c0_17 = arith.constant 0 : index
    %17 = vector.load %arg1[%c0_14, %c0_15, %c1_16, %c0_17] : memref<1x9x9x4xf32, #tpu.memory_space<vmem>>, vector<1x8x8x4xf32>
    %18 = vector.shape_cast %17 : vector<1x8x8x4xf32> to vector<8x8x4xf32>
    %19 = vector.shape_cast %18 : vector<8x8x4xf32> to vector<64x4xf32>
    %20 = arith.truncf %19 : vector<64x4xf32> to vector<64x4xbf16>
    %c2 = arith.constant 2 : index
    %c0_18 = arith.constant 0 : index
    %c0_19 = arith.constant 0 : index
    %21 = vector.load %arg5[%c2, %c0_18, %c0_19] : memref<9x4x8xbf16, #tpu.memory_space<vmem>>, vector<1x4x8xbf16>
    %22 = vector.shape_cast %21 : vector<1x4x8xbf16> to vector<4x8xbf16>
    %cst_20 = arith.constant dense<0.000000e+00> : vector<64x8xf32>
    %23 = tpu.matmul %20, %22, %cst_20 {dimension_numbers = #tpu.dot_dimension_numbers<[1], [0], [0], [1], [0, 0, 1, 1], [], []>} : vector<64x4xbf16>, vector<4x8xbf16>, vector<64x8xf32> -> vector<64x8xf32>
    %24 = arith.addf %16, %23 : vector<64x8xf32>
    %c0_21 = arith.constant 0 : index
    %c0_22 = arith.constant 0 : index
    %c0_23 = arith.constant 0 : index
    %c0_24 = arith.constant 0 : index
    %25 = vector.load %arg3[%c0_21, %c0_22, %c0_23, %c0_24] : memref<1x9x9x4xf32, #tpu.memory_space<vmem>>, vector<1x8x8x4xf32>
    %26 = vector.shape_cast %25 : vector<1x8x8x4xf32> to vector<8x8x4xf32>
    %27 = vector.shape_cast %26 : vector<8x8x4xf32> to vector<64x4xf32>
    %28 = arith.truncf %27 : vector<64x4xf32> to vector<64x4xbf16>
    %c3 = arith.constant 3 : index
    %c0_25 = arith.constant 0 : index
    %c0_26 = arith.constant 0 : index
    %29 = vector.load %arg5[%c3, %c0_25, %c0_26] : memref<9x4x8xbf16, #tpu.memory_space<vmem>>, vector<1x4x8xbf16>
    %30 = vector.shape_cast %29 : vector<1x4x8xbf16> to vector<4x8xbf16>
    %cst_27 = arith.constant dense<0.000000e+00> : vector<64x8xf32>
    %31 = tpu.matmul %28, %30, %cst_27 {dimension_numbers = #tpu.dot_dimension_numbers<[1], [0], [0], [1], [0, 0, 1, 1], [], []>} : vector<64x4xbf16>, vector<4x8xbf16>, vector<64x8xf32> -> vector<64x8xf32>
    %32 = arith.addf %24, %31 : vector<64x8xf32>
    %c0_28 = arith.constant 0 : index
    %c0_29 = arith.constant 0 : index
    %c0_30 = arith.constant 0 : index
    %c0_31 = arith.constant 0 : index
    %33 = vector.load %arg4[%c0_28, %c0_29, %c0_30, %c0_31] : memref<1x9x9x4xf32, #tpu.memory_space<vmem>>, vector<1x8x8x4xf32>
    %34 = vector.shape_cast %33 : vector<1x8x8x4xf32> to vector<8x8x4xf32>
    %35 = vector.shape_cast %34 : vector<8x8x4xf32> to vector<64x4xf32>
    %36 = arith.truncf %35 : vector<64x4xf32> to vector<64x4xbf16>
    %c4 = arith.constant 4 : index
    %c0_32 = arith.constant 0 : index
    %c0_33 = arith.constant 0 : index
    %37 = vector.load %arg5[%c4, %c0_32, %c0_33] : memref<9x4x8xbf16, #tpu.memory_space<vmem>>, vector<1x4x8xbf16>
    %38 = vector.shape_cast %37 : vector<1x4x8xbf16> to vector<4x8xbf16>
    %cst_34 = arith.constant dense<0.000000e+00> : vector<64x8xf32>
    %39 = tpu.matmul %36, %38, %cst_34 {dimension_numbers = #tpu.dot_dimension_numbers<[1], [0], [0], [1], [0, 0, 1, 1], [], []>} : vector<64x4xbf16>, vector<4x8xbf16>, vector<64x8xf32> -> vector<64x8xf32>
    %40 = arith.addf %32, %39 : vector<64x8xf32>
    %c0_35 = arith.constant 0 : index
    %c0_36 = arith.constant 0 : index
    %c1_37 = arith.constant 1 : index
    %c0_38 = arith.constant 0 : index
    %41 = vector.load %arg3[%c0_35, %c0_36, %c1_37, %c0_38] : memref<1x9x9x4xf32, #tpu.memory_space<vmem>>, vector<1x8x8x4xf32>
    %42 = vector.shape_cast %41 : vector<1x8x8x4xf32> to vector<8x8x4xf32>
    %43 = vector.shape_cast %42 : vector<8x8x4xf32> to vector<64x4xf32>
    %44 = arith.truncf %43 : vector<64x4xf32> to vector<64x4xbf16>
    %c5 = arith.constant 5 : index
    %c0_39 = arith.constant 0 : index
    %c0_40 = arith.constant 0 : index
    %45 = vector.load %arg5[%c5, %c0_39, %c0_40] : memref<9x4x8xbf16, #tpu.memory_space<vmem>>, vector<1x4x8xbf16>
    %46 = vector.shape_cast %45 : vector<1x4x8xbf16> to vector<4x8xbf16>
    %cst_41 = arith.constant dense<0.000000e+00> : vector<64x8xf32>
    %47 = tpu.matmul %44, %46, %cst_41 {dimension_numbers = #tpu.dot_dimension_numbers<[1], [0], [0], [1], [0, 0, 1, 1], [], []>} : vector<64x4xbf16>, vector<4x8xbf16>, vector<64x8xf32> -> vector<64x8xf32>
    %48 = arith.addf %40, %47 : vector<64x8xf32>
    %c0_42 = arith.constant 0 : index
    %c1_43 = arith.constant 1 : index
    %c0_44 = arith.constant 0 : index
    %c0_45 = arith.constant 0 : index
    %49 = vector.load %arg1[%c0_42, %c1_43, %c0_44, %c0_45] : memref<1x9x9x4xf32, #tpu.memory_space<vmem>>, vector<1x8x8x4xf32>
    %50 = vector.shape_cast %49 : vector<1x8x8x4xf32> to vector<8x8x4xf32>
    %51 = vector.shape_cast %50 : vector<8x8x4xf32> to vector<64x4xf32>
    %52 = arith.truncf %51 : vector<64x4xf32> to vector<64x4xbf16>
    %c6 = arith.constant 6 : index
    %c0_46 = arith.constant 0 : index
    %c0_47 = arith.constant 0 : index
    %53 = vector.load %arg5[%c6, %c0_46, %c0_47] : memref<9x4x8xbf16, #tpu.memory_space<vmem>>, vector<1x4x8xbf16>
    %54 = vector.shape_cast %53 : vector<1x4x8xbf16> to vector<4x8xbf16>
    %cst_48 = arith.constant dense<0.000000e+00> : vector<64x8xf32>
    %55 = tpu.matmul %52, %54, %cst_48 {dimension_numbers = #tpu.dot_dimension_numbers<[1], [0], [0], [1], [0, 0, 1, 1], [], []>} : vector<64x4xbf16>, vector<4x8xbf16>, vector<64x8xf32> -> vector<64x8xf32>
    %56 = arith.addf %48, %55 : vector<64x8xf32>
    %c0_49 = arith.constant 0 : index
    %c1_50 = arith.constant 1 : index
    %c0_51 = arith.constant 0 : index
    %c0_52 = arith.constant 0 : index
    %57 = vector.load %arg2[%c0_49, %c1_50, %c0_51, %c0_52] : memref<1x9x9x4xf32, #tpu.memory_space<vmem>>, vector<1x8x8x4xf32>
    %58 = vector.shape_cast %57 : vector<1x8x8x4xf32> to vector<8x8x4xf32>
    %59 = vector.shape_cast %58 : vector<8x8x4xf32> to vector<64x4xf32>
    %60 = arith.truncf %59 : vector<64x4xf32> to vector<64x4xbf16>
    %c7 = arith.constant 7 : index
    %c0_53 = arith.constant 0 : index
    %c0_54 = arith.constant 0 : index
    %61 = vector.load %arg5[%c7, %c0_53, %c0_54] : memref<9x4x8xbf16, #tpu.memory_space<vmem>>, vector<1x4x8xbf16>
    %62 = vector.shape_cast %61 : vector<1x4x8xbf16> to vector<4x8xbf16>
    %cst_55 = arith.constant dense<0.000000e+00> : vector<64x8xf32>
    %63 = tpu.matmul %60, %62, %cst_55 {dimension_numbers = #tpu.dot_dimension_numbers<[1], [0], [0], [1], [0, 0, 1, 1], [], []>} : vector<64x4xbf16>, vector<4x8xbf16>, vector<64x8xf32> -> vector<64x8xf32>
    %64 = arith.addf %56, %63 : vector<64x8xf32>
    %c0_56 = arith.constant 0 : index
    %c1_57 = arith.constant 1 : index
    %c1_58 = arith.constant 1 : index
    %c0_59 = arith.constant 0 : index
    %65 = vector.load %arg1[%c0_56, %c1_57, %c1_58, %c0_59] : memref<1x9x9x4xf32, #tpu.memory_space<vmem>>, vector<1x8x8x4xf32>
    %66 = vector.shape_cast %65 : vector<1x8x8x4xf32> to vector<8x8x4xf32>
    %67 = vector.shape_cast %66 : vector<8x8x4xf32> to vector<64x4xf32>
    %68 = arith.truncf %67 : vector<64x4xf32> to vector<64x4xbf16>
    %c8 = arith.constant 8 : index
    %c0_60 = arith.constant 0 : index
    %c0_61 = arith.constant 0 : index
    %69 = vector.load %arg5[%c8, %c0_60, %c0_61] : memref<9x4x8xbf16, #tpu.memory_space<vmem>>, vector<1x4x8xbf16>
    %70 = vector.shape_cast %69 : vector<1x4x8xbf16> to vector<4x8xbf16>
    %cst_62 = arith.constant dense<0.000000e+00> : vector<64x8xf32>
    %71 = tpu.matmul %68, %70, %cst_62 {dimension_numbers = #tpu.dot_dimension_numbers<[1], [0], [0], [1], [0, 0, 1, 1], [], []>} : vector<64x4xbf16>, vector<4x8xbf16>, vector<64x8xf32> -> vector<64x8xf32>
    %72 = arith.addf %64, %71 : vector<64x8xf32>
    %c0_63 = arith.constant 0 : index
    %c0_64 = arith.constant 0 : index
    %73 = vector.load %arg6[%c0_63, %c0_64] : memref<1x8xf32, #tpu.memory_space<vmem>>, vector<1x8xf32>
    %74 = vector.broadcast %73 : vector<1x8xf32> to vector<64x8xf32>
    %75 = arith.addf %72, %74 : vector<64x8xf32>
    %cst_65 = arith.constant 0.000000e+00 : f32
    %76 = vector.broadcast %cst_65 : f32 to vector<64x8xf32>
    %77 = arith.maximumf %75, %76 : vector<64x8xf32>
    %78 = vector.shape_cast %77 : vector<64x8xf32> to vector<8x8x8xf32>
    %c0_66 = arith.constant 0 : index
    %c0_67 = arith.constant 0 : index
    %c0_68 = arith.constant 0 : index
    %c0_69 = arith.constant 0 : index
    %79 = vector.load %arg7[%c0_66, %c0_67, %c0_68, %c0_69] : memref<1x8x8x8xf32, #tpu.memory_space<vmem>>, vector<1x8x8x8xf32>
    %80 = vector.shape_cast %79 : vector<1x8x8x8xf32> to vector<8x8x8xf32>
    %81 = vector.shape_cast %78 : vector<8x8x8xf32> to vector<1x8x8x8xf32>
    tpu.vector_store %arg7[%c0_66, %c0_67, %c0_68, %c0_69], %81 {strides = array<i32>} : memref<1x8x8x8xf32, #tpu.memory_space<vmem>>, vector<1x8x8x8xf32>,
    return
  }
  func.func @transform_0(%arg0: i32) -> (i32, i32, i32, i32) {
    %c0_i32 = arith.constant 0 : i32
    %c0_i32_0 = arith.constant 0 : i32
    %c0_i32_1 = arith.constant 0 : i32
    %c0_i32_2 = arith.constant 0 : i32
    return %arg0, %c0_i32, %c0_i32_0, %c0_i32_1 : i32, i32, i32, i32
  }
  func.func @transform_1(%arg0: i32) -> (i32, i32, i32, i32) {
    %c0_i32 = arith.constant 0 : i32
    %c0_i32_0 = arith.constant 0 : i32
    %c0_i32_1 = arith.constant 0 : i32
    %c0_i32_2 = arith.constant 0 : i32
    return %arg0, %c0_i32, %c0_i32_0, %c0_i32_1 : i32, i32, i32, i32
  }
  func.func @transform_2(%arg0: i32) -> (i32, i32, i32, i32) {
    %c0_i32 = arith.constant 0 : i32
    %c0_i32_0 = arith.constant 0 : i32
    %c0_i32_1 = arith.constant 0 : i32
    %c0_i32_2 = arith.constant 0 : i32
    return %arg0, %c0_i32, %c0_i32_0, %c0_i32_1 : i32, i32, i32, i32
  }
  func.func @transform_3(%arg0: i32) -> (i32, i32, i32, i32) {
    %c0_i32 = arith.constant 0 : i32
    %c0_i32_0 = arith.constant 0 : i32
    %c0_i32_1 = arith.constant 0 : i32
    %c0_i32_2 = arith.constant 0 : i32
    return %arg0, %c0_i32, %c0_i32_0, %c0_i32_1 : i32, i32, i32, i32
  }
  func.func @transform_4(%arg0: i32) -> (i32, i32, i32) {
    %c0_i32 = arith.constant 0 : i32
    %c0_i32_0 = arith.constant 0 : i32
    %c0_i32_1 = arith.constant 0 : i32
    %c0_i32_2 = arith.constant 0 : i32
    return %c0_i32, %c0_i32_0, %c0_i32_1 : i32, i32, i32
  }
  func.func @transform_5(%arg0: i32) -> (i32, i32) {
    %c0_i32 = arith.constant 0 : i32
    %c0_i32_0 = arith.constant 0 : i32
    %c0_i32_1 = arith.constant 0 : i32
    return %c0_i32, %c0_i32_0 : i32, i32
  }
  func.func @transform_6(%arg0: i32) -> (i32, i32, i32, i32) {
    %c0_i32 = arith.constant 0 : i32
    %c0_i32_0 = arith.constant 0 : i32
    %c0_i32_1 = arith.constant 0 : i32
    %c0_i32_2 = arith.constant 0 : i32
    return %arg0, %c0_i32, %c0_i32_0, %c0_i32_1 : i32, i32, i32, i32
  }
}

</mosaic_0001>

<bundles_post_ra>
// kernel: tpu_custom_call.1
= control target key start
LH: loop header
LB: loop body
LE: loop exit
PB: predicated region body
PF: predicated region fallthrough
CT: control target
= control target key end

     0   :  { %11 = vsyncpa [#allocation3], 0  ;;  %s2119_s0 = inlined_call_operand.vmem [shape: f32[2,9,9,4], index: 0, kind: input, shape index: {}]   ;;  %s2120_s1 = inlined_call_operand.vmem [shape: f32[2,9,9,4], index: 1, kind: input, shape index: {}]   ;;  %s2121_s2 = inlined_call_operand.vmem [shape: f32[2,9,9,4], index: 2, kind: input, shape index: {}]   ;;  %s2122_s3 = inlined_call_operand.vmem [shape: f32[2,9,9,4], index: 3, kind: input, shape index: {}]   ;;  %s2123_s4 = inlined_call_operand.vmem [shape: bf16[9,4,8], index: 4, kind: input, shape index: {}]   ;;  %s2124_s5 = inlined_call_operand.vmem [shape: f32[1,8], index: 5, kind: input, shape index: {}]   ;;  %s2125_s6 = inlined_call_operand.hbm [shape: f32[2,8,8,8], index: 6, kind: output, shape index: {}]  }
   0x1   :  { %13 = vsyncpa [#allocation3 + $0x1], 0  ;;  %s1799_s21 = smov 0   ;;  %s1801_s22 = smov 0  }
   0x2   :  { %s1803_s23 = smov 0   ;;  %s1805_s24 = smov 0  }
   0x3 LB: > { %s1820_s25 = sadd.s32 4294967295, %s1759_s24   ;;  %s1360_s26 = sadd.s32 4294967294, %s1759_s24   ;;  %s1759_s24 = sphi %s1805_s24, %s2131_s24   ;;  %s1755_s23 = sphi %s1803_s23, %s2130_s23   ;;  %s1751_s22 = sphi %s1801_s22, %s2129_s22   ;;  %s1747_s21 = sphi %s1799_s21, %s2128_s21  }
   0x4   : > { %s1824_s27 = sadd.s32 1, %s1759_s24   ;;  %s172_s28 = sadd.s32 1, %s1755_s23 }
   0x5   : > { %s169_s29 = ssub.s32 %s1759_s24, %s1824_s27  ;;  %p182_p0 = scmp.ne.s32.totalorder %s1755_s23, %s1751_s22 }
   0x6   : > { %p170_p1 = scmp.eq.s32.totalorder %s169_s29, 0  ;;  %p183_p2 = scmp.eq.s32.totalorder %s1820_s25, 1 }
   0x7   : > { %p188_p3 = scmp.ne.s32.totalorder %s1751_s22, %s1747_s21  ;;  %p189_p4 = scmp.eq.s32.totalorder %s1360_s26, 1 }
   0x8   : > { %s1835_s30 = scalar_select %p170_p1, %s1755_s23, %s172_s28  }
   0x9   : > { %p1837_p5 = por %p183_p2, %p182_p0  ;;  %p1841_p6 = por %p189_p4, %p188_p3 }
   0xa   : > { %p1363_p7 = scmp.ge.s32.totalorder %s1759_s24, 1  ;;  %p245_p8 = scmp.lt.s32.totalorder %s1759_s24, 3 }
   0xc   : > { %p246_p9 = pnand %p1363_p7, %p245_p8 }
   0xd   : > { %v1369_v0 = vld [vmem:[%s2123_s4 + $0x2] sm:$0x3] (!%p246_p9)  ;;  %vm351_vm0 = vcmask (!%p246_p9), 1041408   ;;  %v1853_v1 = vld [vmem:[%s2123_s4 + $0x8] sm:$0x3] (!%p246_p9)  ;;  %p290_p10 = scmp.lt.s32.totalorder (!%p246_p9), %s1820_s25, 1 }
   0xe   : > { %249 = sbr.rel (%p246_p9) target bundleno = 336 (0x150), region = 44  ;;  %1645 = vmatprep.subr.msk.bf16.mxu1 (!%p246_p9), %vm351_vm0, %v1369_v0  ;;  %1649 = vmatprep.subr.msk.bf16.mxu0 (!%p246_p9), %vm351_vm0, %v1853_v1  ;;  %v353_v2 = vsel (!%p246_p9), %vm351_vm0, %v1369_v0, 0  ;;  %v1862_v3 = vsel (!%p246_p9), %vm351_vm0, %v1853_v1, 0  ;;  %v323_v4 = vld [vmem:[%s2123_s4] sm:$0x3] (!%p246_p9)  ;;  %vm338_vm1 = vcmask (!%p246_p9), 31744  }
   0xf   : > { %1490 = vmatpush3.bf16.msra.mxu1 (!%p246_p9), %v353_v2  ;;  %1530 = vmatpush3.bf16.msra.mxu0 (!%p246_p9), %v1862_v3  ;;  %v1393_v5 = vld [vmem:[%s2123_s4 + $0xa] sm:$0x3] (!%p246_p9)  ;;  %v433_v15 = vsel (!%p246_p9), %vm351_vm0, %v323_v4, 0  ;;  %v1406_v25 = vld [vmem:[%s2123_s4 + $0xc] sm:$0x3] (!%p246_p9)  ;;  %vm1239_vm2 = vcmask (!%p246_p9), 64512  }
  0x10   : > { %1646 = vmatprep.subr.msk.bf16.mxu1 (!%p246_p9), %vm351_vm0, %v323_v4  ;;  %1651 = vmatprep.subr.msk.bf16.mxu0 (!%p246_p9), %vm351_vm0, %v1393_v5  ;;  %v833_v20 = vsel (!%p246_p9), %vm351_vm0, %v1393_v5, 0  ;;  %v1378_v29 = vld [vmem:[%s2123_s4 + $0x4] sm:$0x3] (!%p246_p9)  ;;  %v936_v44 = vsel (!%p246_p9), %vm351_vm0, %v1406_v25, 0  ;;  %v1419_v46 = vld [vmem:[%s2123_s4 + $0xe] sm:$0x3] (!%p246_p9) }
  0x11   : > { %v527_v48 = vsel (!%p246_p9), %vm351_vm0, %v1378_v29, 0  ;;  %v1383_v51 = vld [vmem:[%s2123_s4 + $0x6] sm:$0x3] (!%p246_p9)  ;;  %v1039_v4 = vsel (!%p246_p9), %vm351_vm0, %v1419_v46, 0  ;;  %s1443_s16 = sshll.u32 (!%p246_p9), %s1820_s25, 10  ;;  %s1761_s29 = smov (!%p246_p9), [#allocation2]  }
  0x12   : > { %s2066_s20 = scalar_lea.hbm (!%p246_p9), %s2125_s6, %s1443_s16  ;;  %s1701_s10 = sshll.u32 (!%p246_p9), %s1761_s29, 4  ;;  %s1702_s10 = int_to_ptr.vmem [resolvable:$false] %s1701_s10 }
  0x13   : > { %s1703_s11 = scalar_lea.vmem (!%p246_p9), %s1702_s10, 2048 }
  0x15   : > { %s291_s15 = scalar_select %p290_p10, %s1820_s25, 1 }
  0x17   : > { %s1655_s18 = smul.u32 144, %s291_s15 }
  0x19   : > { %s1877_s26 = scalar_lea.vmem %s2120_s1, %s1655_s18  ;;  %s1886_s9 = scalar_lea.vmem %s2122_s3, %s1655_s18 }
  0x1a   : > { %v324_v6 = vld [vmem:[%s1877_s26] sm:$0xff]  ;;  %v1881_v7 = vld [vmem:[%s1877_s26 + $0x10] sm:$0xff]  ;;  %s1900_s12 = scalar_lea.vmem %s2121_s2, %s1655_s18  ;;  %s1913_s15 = scalar_lea.vmem %s2119_s0, %s1655_s18 }
  0x1b   : > { %v1889_v8 = vld [vmem:[%s1877_s26 + $0x20] sm:$0xff]  ;;  %v332_v9 = vpack.c.bf16 %v1881_v7, %v324_v6  ;;  %v705_v11 = vld [vmem:[%s1886_s9 + $0x10] sm:$0xff] }
  0x1c   : > { %v704_v10 = vld [vmem:[%s1886_s9] sm:$0xff]  ;;  %v1895_v12 = vld [vmem:[%s1877_s26 + $0x30] sm:$0xff] }
  0x1d   : > { %v712_v13 = vpack.c.bf16 %v705_v11, %v704_v10  ;;  %v333_v14 = vpack.c.bf16 %v1895_v12, %v1889_v8  ;;  %v706_v16 = vld [vmem:[%s1886_s9 + $0x20] sm:$0xff]  ;;  %v707_v17 = vld [vmem:[%s1886_s9 + $0x30] sm:$0xff]  ;;  %1491 = vmatprep.mubr.msk.bf16.mxu1 %vm338_vm1, %v332_v9  ;;  %v629_v10 = vsel %vm351_vm0, %v1383_v51, 0 }
  0x1e   : > { %v1908_v18 = vld [vmem:[%s1877_s26 + $0x40] sm:$0xff]  ;;  %v713_v19 = vpack.c.bf16 %v707_v17, %v706_v16  ;;  %v1918_v21 = vld [vmem:[%s1877_s26 + $0x50] sm:$0xff]  ;;  %v1020_v16 = vpack.c.bf16 %v1889_v8, %v1881_v7 }
  0x1f   : > { %1531 = vmatprep.mubr.msk.bf16.mxu0 %vm338_vm1, %v712_v13  ;;  %1492 = vmatmul.mubr.msk.bf16.vlgmr.msra.gmra.mrb[0].mxu1 %vm338_vm1, %v333_v14  ;;  %v334_v22 = vpack.c.bf16 %v1918_v21, %v1908_v18  ;;  %v806_v23 = vld [vmem:[%s1900_s12 + $0x1] sm:$0xff]  ;;  %v807_v24 = vld [vmem:[%s1900_s12 + $0x11] sm:$0xff] }
  0x20   : > { %1500 = vmatpush3.bf16.msra.mxu1 %v433_v15  ;;  %1532 = vmatmul.mubr.msk.bf16.vlgmr.msra.gmra.mrb[0].mxu0 %vm338_vm1, %v713_v19  ;;  %v1931_v26 = vld [vmem:[%s1877_s26 + $0x60] sm:$0xff]  ;;  %v1934_v27 = vld [vmem:[%s1877_s26 + $0x70] sm:$0xff]  ;;  %v814_v28 = vpack.c.bf16 %v807_v24, %v806_v23  ;;  %v1021_v23 = vpack.c.bf16 %v1908_v18, %v1895_v12 }
  0x21   : > { %1540 = vmatpush3.bf16.msra.mxu0 %v833_v20  ;;  %1495 = vmatprep.mubr.msk.bf16.mxu1 %vm338_vm1, %v334_v22  ;;  %v311_v30 = vld [vmem:[%s1913_s15] sm:$0xff]  ;;  %v312_v31 = vld [vmem:[%s1913_s15 + $0x10] sm:$0xff]  ;;  %v335_v32 = vpack.c.bf16 %v1934_v27, %v1931_v26 }
  0x22   : > { %1541 = vmatprep.mubr.msk.bf16.mxu0 %vm338_vm1, %v814_v28  ;;  %1652 = vmatprep.subr.msk.bf16.mxu0 %vm351_vm0, %v1406_v25  ;;  %v319_v33 = vpack.c.bf16 %v312_v31, %v311_v30  ;;  %v808_v34 = vld [vmem:[%s1900_s12 + $0x21] sm:$0xff]  ;;  %v809_v35 = vld [vmem:[%s1900_s12 + $0x31] sm:$0xff] }
  0x23   : > { %1647 = vmatprep.subr.msk.bf16.mxu1 %vm351_vm0, %v1378_v29  ;;  %v810_v36 = vld [vmem:[%s1900_s12 + $0x41] sm:$0xff]  ;;  %v811_v37 = vld [vmem:[%s1900_s12 + $0x51] sm:$0xff]  ;;  %v815_v38 = vpack.c.bf16 %v809_v35, %v808_v34 }
  0x24   : > { %v313_v39 = vld [vmem:[%s1913_s15 + $0x20] sm:$0xff]  ;;  %v314_v40 = vld [vmem:[%s1913_s15 + $0x30] sm:$0xff]  ;;  %v816_v41 = vpack.c.bf16 %v811_v37, %v810_v36 }
  0x25   : > { %v315_v42 = vld [vmem:[%s1913_s15 + $0x40] sm:$0xff]  ;;  %v316_v43 = vld [vmem:[%s1913_s15 + $0x50] sm:$0xff]  ;;  %v320_v45 = vpack.c.bf16 %v314_v40, %v313_v39  ;;  %v917_v55 = vpack.c.bf16 %v313_v39, %v312_v31 }
  0x26   : > { %v321_v47 = vpack.c.bf16 %v316_v43, %v315_v42  ;;  %v812_v49 = vld [vmem:[%s1900_s12 + $0x61] sm:$0xff]  ;;  %v813_v50 = vld [vmem:[%s1900_s12 + $0x71] sm:$0xff]  ;;  %v918_v60 = vpack.c.bf16 %v315_v42, %v314_v40 }
  0x27   : > { %1496 = vmatmul.mubr.msk.bf16.gmra.mrb[4].mxu1 %vm338_vm1, %v335_v32  ;;  %v817_v52 = vpack.c.bf16 %v813_v50, %v812_v49  ;;  %v317_v53 = vld [vmem:[%s1913_s15 + $0x60] sm:$0xff]  ;;  %v318_v54 = vld [vmem:[%s1913_s15 + $0x70] sm:$0xff] }
  0x28   : > { %1501 = vmatprep.mubr.msk.bf16.mxu1 %vm338_vm1, %v319_v33  ;;  %v500_v56 = vld [vmem:[%s1913_s15 + $0x1] sm:$0xff]  ;;  %v1976_v57 = vld [vmem:[%s1913_s15 + $0x11] sm:$0xff]  ;;  %v322_v58 = vpack.c.bf16 %v318_v54, %v317_v53  ;;  %v919_v63 = vpack.c.bf16 %v317_v53, %v316_v43 }
  0x29   : > { %v508_v59 = vpack.c.bf16 %v1976_v57, %v500_v56  ;;  %v502_v61 = vld [vmem:[%s1913_s15 + $0x21] sm:$0xff]  ;;  %v503_v62 = vld [vmem:[%s1913_s15 + $0x31] sm:$0xff] }
  0x2a   : > { %v504_v0 = vld [vmem:[%s1913_s15 + $0x41] sm:$0xff]  ;;  %v505_v2 = vld [vmem:[%s1913_s15 + $0x51] sm:$0xff]  ;;  %v509_v5 = vpack.c.bf16 %v503_v62, %v502_v61  ;;  %v1122_v31 = vpack.c.bf16 %v502_v61, %v1976_v57 }
  0x2b   : > { %v1432_v6 = vld [vmem:[%s2123_s4 + $0x10] sm:$0x3]  ;;  %v510_v9 = vpack.c.bf16 %v505_v2, %v504_v0  ;;  %v1405_v11 = vld [vmem:[%s1913_s15 + $0x80] sm:$0xff] }
  0x2c   : > { %1542 = vmatmul.mubr.msk.bf16.vlgmr.msra.gmra.mrb[0].mxu0 %vm338_vm1, %v815_v38  ;;  %v920_v13 = vpack.c.bf16 %v1405_v11, %v318_v54  ;;  %v506_v14 = vld [vmem:[%s1913_s15 + $0x61] sm:$0xff]  ;;  %v507_v15 = vld [vmem:[%s1913_s15 + $0x71] sm:$0xff]  ;;  %v1141_v28 = vsel %vm351_vm0, %v1432_v6, 0 }
  0x2d   : > { %1550 = vmatpush3.bf16.msra.mxu0 %v936_v44  ;;  %1545 = vmatprep.mubr.msk.bf16.mxu0 %vm338_vm1, %v816_v41  ;;  %v602_v17 = vld [vmem:[%s1900_s12] sm:$0xff]  ;;  %v603_v19 = vld [vmem:[%s1900_s12 + $0x10] sm:$0xff]  ;;  %v511_v20 = vpack.c.bf16 %v507_v15, %v506_v14 }
  0x2e   : > { %1653 = vmatprep.subr.msk.bf16.mxu0 %vm351_vm0, %v1419_v46  ;;  %v610_v22 = vpack.c.bf16 %v603_v19, %v602_v17  ;;  %v604_v7 = vld [vmem:[%s1900_s12 + $0x20] sm:$0xff]  ;;  %v605_v8 = vld [vmem:[%s1900_s12 + $0x30] sm:$0xff] }
  0x2f   : > { %1502 = vmatmul.mubr.msk.bf16.vlgmr.msra.gmra.mrb[0].mxu1 %vm338_vm1, %v320_v45  ;;  %v606_v24 = vld [vmem:[%s1900_s12 + $0x40] sm:$0xff]  ;;  %v607_v25 = vld [vmem:[%s1900_s12 + $0x50] sm:$0xff]  ;;  %v611_v29 = vpack.c.bf16 %v605_v8, %v604_v7 }
  0x30   : > { %1510 = vmatpush3.bf16.msra.mxu1 %v527_v48  ;;  %1505 = vmatprep.mubr.msk.bf16.mxu1 %vm338_vm1, %v321_v47  ;;  %v612_v30 = vpack.c.bf16 %v607_v25, %v606_v24  ;;  %v1418_v12 = vld [vmem:[%s1877_s26 + $0x80] sm:$0xff]  ;;  %v709_v33 = vld [vmem:[%s1886_s9 + $0x50] sm:$0xff]  ;;  %s287_s26 = sand.u32 1, %s1751_s22  }
  0x31   : > { %1648 = vmatprep.subr.msk.bf16.mxu1 %vm351_vm0, %v1383_v51  ;;  %v1023_v18 = vpack.c.bf16 %v1418_v12, %v1934_v27  ;;  %v708_v32 = vld [vmem:[%s1886_s9 + $0x40] sm:$0xff]  ;;  %v1124_v27 = vpack.c.bf16 %v506_v14, %v505_v2  ;;  %v711_v37 = vld [vmem:[%s1886_s9 + $0x70] sm:$0xff]  ;;  %s2078_s25 = scalar_lea.sflag [#allocation3], %s287_s26 }
  0x32   : > { %v714_v35 = vpack.c.bf16 %v709_v33, %v708_v32  ;;  %v710_v36 = vld [vmem:[%s1886_s9 + $0x60] sm:$0xff]  ;;  %s1364_s9 = sshll.u32 %s287_s26, 6 }
  0x33   : > { %v1431_v38 = vld [vmem:[%s1913_s15 + $0x81] sm:$0xff]  ;;  %v715_v39 = vpack.c.bf16 %v711_v37, %v710_v36  ;;  %v1437_v46 = vld [vmem:[%s2124_s5] ss:$0 sm:$0xff]  ;;  %s2049_s15 = scalar_lea.vmem [#allocation2], %s1364_s9 }
  0x34   : > { %1546 = vmatmul.mubr.msk.bf16.gmra.mrb[4].mxu0 %vm338_vm1, %v817_v52  ;;  %v1125_v40 = vpack.c.bf16 %v1431_v38, %v507_v15  ;;  %s1262_s17 = sshll.u32 %s2049_s15, 4  ;;  %s2068_s17 = int_to_ptr.vmem [resolvable:$true] %s1262_s17 }
  0x35   : > { %1551 = vmatprep.mubr.msk.bf16.mxu0 %vm338_vm1, %v917_v55  ;;  %s1697_s28 = scalar_lea.vmem %s2068_s17, 1024  ;;  %p1704_p0 = scmp.lt.s32.totalorder %s2068_s17, %s1702_s10 }
  0x36   : > { %p1698_p11 = scmp.ne.s32.totalorder %s2068_s17, %s1697_s28  ;;  %p1705_p1 = scmp.lt.s32.totalorder %s1703_s11, %s1697_s28 }
  0x37   : > { %1506 = vmatmul.mubr.msk.bf16.gmra.mrb[4].mxu1 %vm338_vm1, %v322_v58 }
  0x38   : > { %1511 = vmatprep.mubr.msk.bf16.mxu1 %vm338_vm1, %v508_v59  ;;  %p1699_p12 = pnand %p1698_p11, %p1837_p5  ;;  %p1706_p2 = por %p1705_p1, %p1704_p0 }
  0x3a   : > { %p1700_p13 = pneg %p1699_p12 }
  0x3c   : > { %1552 = vmatmul.mubr.msk.bf16.vlgmr.msra.gmra.mrb[0].mxu0 %vm338_vm1, %v918_v60  ;;  %p1707_p3 = pnand %p1706_p2, %p1700_p13 }
  0x3d   : > { %1560 = vmatpush3.bf16.msra.mxu0 %v1039_v4  ;;  %1555 = vmatprep.mubr.msk.bf16.mxu0 %vm338_vm1, %v919_v63 }
  0x3e   : > { %1654 = vmatprep.subr.msk.bf16.mxu0 %vm351_vm0, %v1432_v6 }
  0x3f   : > { %1512 = vmatmul.mubr.msk.bf16.vlgmr.msra.gmra.mrb[0].mxu1 %vm338_vm1, %v509_v5 }
  0x40   : > { %1520 = vmatpush3.bf16.msra.mxu1 %v629_v10  ;;  %1515 = vmatprep.mubr.msk.bf16.mxu1 %vm338_vm1, %v510_v9 }
  0x41   : > { %1650 = vmatprep.subr.msk.bf16.mxu1 %vm351_vm0, %v1853_v1  ;;  %v1022_v1 = vpack.c.bf16 %v1931_v26, %v1918_v21  ;;  %v608_v21 = vld [vmem:[%s1900_s12 + $0x60] sm:$0xff]  ;;  %v609_v26 = vld [vmem:[%s1900_s12 + $0x70] sm:$0xff] }
  0x42   : > { %v613_v34 = vpack.c.bf16 %v609_v26, %v608_v21 }
  0x44   : > { %1556 = vmatmul.mubr.msk.bf16.gmra.mrb[4].mxu0 %vm338_vm1, %v920_v13 }
  0x45   : > { %1561 = vmatprep.mubr.msk.bf16.mxu0 %vm338_vm1, %v1020_v16 }
  0x47   : > { %1516 = vmatmul.mubr.msk.bf16.gmra.mrb[4].mxu1 %vm338_vm1, %v511_v20 }
  0x48   : > { %1521 = vmatprep.mubr.msk.bf16.mxu1 %vm338_vm1, %v610_v22 }
  0x4c   : > { %1562 = vmatmul.mubr.msk.bf16.vlgmr.msra.gmra.mrb[0].mxu0 %vm338_vm1, %v1021_v23 }
  0x4d   : > { %1570 = vmatpush3.bf16.msra.mxu0 %v1141_v28  ;;  %1565 = vmatprep.mubr.msk.bf16.mxu0 %vm338_vm1, %v1022_v1 }
  0x4f   : > { %1522 = vmatmul.mubr.msk.bf16.vlgmr.msra.gmra.mrb[0].mxu1 %vm338_vm1, %v611_v29 }
  0x50   : > { %1580 = vmatpush3.bf16.msra.mxu1 %v1862_v3  ;;  %1525 = vmatprep.mubr.msk.bf16.mxu1 %vm338_vm1, %v612_v30  ;;  %v1123_v3 = vpack.c.bf16 %v504_v0, %v503_v62 }
  0x54   : > { %1566 = vmatmul.mubr.msk.bf16.gmra.mrb[4].mxu0 %vm338_vm1, %v1023_v18 }
  0x55   : > { %1571 = vmatprep.mubr.msk.bf16.mxu0 %vm338_vm1, %v1122_v31 }
  0x57   : > { %1526 = vmatmul.mubr.msk.bf16.gmra.mrb[4].mxu1 %vm338_vm1, %v613_v34 }
  0x58   : > { %1535 = vmatprep.mubr.msk.bf16.mxu1 %vm338_vm1, %v714_v35 }
  0x5c   : > { %1572 = vmatmul.mubr.msk.bf16.vlgmr.msra.gmra.mrb[0].mxu0 %vm338_vm1, %v1123_v3 }
  0x5d   : > { %1575 = vmatprep.mubr.msk.bf16.mxu0 %vm338_vm1, %v1124_v27 }
  0x63   : > { %1536 = vmatmul.mubr.msk.bf16.vlgmr.msra.gmra.mrb[4].mxu1 %vm338_vm1, %v715_v39 }
  0x64   : > { %1576 = vmatmul.mubr.msk.bf16.gmra.mrb[4].mxu0 %vm338_vm1, %v1125_v40 }
 0x122   : > { %v1523_v41 = vpop.f32.mrb[0].mxu1 }
 0x123   : > { %v665_v42 = vpop.f32.mrb[1].mxu1 }
 0x124   : > { %v1524_v43 = vpop.f32.mrb[2].mxu1 }
 0x125   : > { %v668_v44 = vpop.f32.mrb[3].mxu1 }
 0x12f   : > { %v1573_v45 = vpop.f32.mrb[0].mxu0 }
 0x130   : > { %v1581_v47 = vadd.f32 %v1573_v45, %v1523_v41  ;;  %v1177_v48 = vpop.f32.mrb[1].mxu0 }
 0x131   : > { %v1582_v49 = vadd.f32 %v1177_v48, %v665_v42  ;;  %v1574_v50 = vpop.f32.mrb[2].mxu0 }
 0x132   : > { %v1225_v51 = vadd.f32 %v1581_v47, %v1437_v46  ;;  %v1583_v52 = vadd.f32 %v1574_v50, %v1524_v43  ;;  %v1180_v53 = vpop.f32.mrb[3].mxu0 }
 0x133   : > { %v1223_v54 = vadd.f32 %v1582_v49, %v1437_v46  ;;  %v1584_v55 = vadd.f32 %v1180_v53, %v668_v44 }
 0x134   : > { %v1233_v56 = vmax.f32 %v1225_v51, 0.0  ;;  %v1226_v57 = vadd.f32 %v1583_v52, %v1437_v46 }
 0x135   : > { %v1231_v58 = vmax.f32 %v1223_v54, 0.0  ;;  %v1224_v59 = vadd.f32 %v1584_v55, %v1437_v46 }
 0x136   : > { %1242 = vst.msk [vmem:[%s2049_s15 + $0x10] sm:$0xff] %vm1239_vm2, %v1233_v56  ;;  %v1234_v60 = vmax.f32 %v1226_v57, 0.0  ;;  %v1537_v61 = vpop.f32.mrb[4].mxu1 }
 0x137   : > { %1240 = vst.msk [vmem:[%s2049_s15] sm:$0xff] %vm1239_vm2, %v1231_v58  ;;  %v1232_v62 = vmax.f32 %v1224_v59, 0.0  ;;  %v1577_v63 = vpop.f32.mrb[4].mxu0  ;;  %v783_v0 = vpop.f32.mrb[5].mxu1 }
 0x138   : > { %1243 = vst.msk [vmem:[%s2049_s15 + $0x18] sm:$0xff] %vm1239_vm2, %v1234_v60  ;;  %v1585_v2 = vadd.f32 %v1577_v63, %v1537_v61  ;;  %v1193_v4 = vpop.f32.mrb[5].mxu0  ;;  %v1538_v5 = vpop.f32.mrb[6].mxu1 }
 0x139   : > { %1241 = vst.msk [vmem:[%s2049_s15 + $0x8] sm:$0xff] %vm1239_vm2, %v1232_v62  ;;  %v1586_v6 = vadd.f32 %v1193_v4, %v783_v0  ;;  %v1578_v9 = vpop.f32.mrb[6].mxu0  ;;  %v786_v10 = vpop.f32.mrb[7].mxu1 }
 0x13a   : > { %v1229_v11 = vadd.f32 %v1585_v2, %v1437_v46  ;;  %v1587_v13 = vadd.f32 %v1578_v9, %v1538_v5  ;;  %v1196_v14 = vpop.f32.mrb[7].mxu0 }
 0x13b   : > { %v1227_v15 = vadd.f32 %v1586_v6, %v1437_v46  ;;  %v1588_v16 = vadd.f32 %v1196_v14, %v786_v10 }
 0x13c   : > { %v1237_v17 = vmax.f32 %v1229_v11, 0.0  ;;  %v1230_v19 = vadd.f32 %v1587_v13, %v1437_v46 }
 0x13d   : > { %v1235_v20 = vmax.f32 %v1227_v15, 0.0  ;;  %v1228_v22 = vadd.f32 %v1588_v16, %v1437_v46 }
 0x13e   : > { %1246 = vst.msk [vmem:[%s2049_s15 + $0x30] sm:$0xff] %vm1239_vm2, %v1237_v17  ;;  %v1238_v23 = vmax.f32 %v1230_v19, 0.0 }
 0x13f   : > { %1244 = vst.msk [vmem:[%s2049_s15 + $0x20] sm:$0xff] %vm1239_vm2, %v1235_v20  ;;  %v1236_v7 = vmax.f32 %v1228_v22, 0.0 }
 0x140   : > { %1247 = vst.msk [vmem:[%s2049_s15 + $0x38] sm:$0xff] %vm1239_vm2, %v1238_v23 }
 0x141   : > { %1245 = vst.msk [vmem:[%s2049_s15 + $0x28] sm:$0xff] %vm1239_vm2, %v1236_v7 }
 0x142   : > { %1710 = shalt.err (!%p1707_p3)
}
 0x143   : > { %s1711_s13 = scalar_lea.hbm %s2066_s20, 1024  ;;  %s1715_s14 = scalar_lea.hbm %s2125_s6, 2048 }
 0x144   : > { %p1712_p4 = scmp.ne.s32.totalorder %s2066_s20, %s1711_s13  ;;  %p1716_p9 = scmp.lt.u32.totalorder %s2066_s20, %s2125_s6 }
 0x145   : > { %p1717_p10 = scmp.lt.u32.totalorder %s1715_s14, %s1711_s13  ;;  %p1719_p12 = scmp.lt.u32.totalorder %s1711_s13, %s2066_s20 }
 0x146   : > { %p1713_p7 = pnand %p1712_p4, %p1837_p5 }
 0x147   : > { %p1718_p11 = por %p1717_p10, %p1716_p9 }
 0x148   : > { %p1714_p8 = pneg %p1713_p7 }
 0x149   : > { %p1720_p13 = por %p1719_p12, %p1718_p11 }
 0x14b   : > { %p1721_p0 = pnand %p1720_p13, %p1714_p8 }
 0x14d   : > { %1724 = shalt.err (!%p1721_p0)
}
 0x14e   : > { %s1762_s16 = smov 128   ;;  %s1763_s18 = smov 8  }
 0x14f   : > { %1656 = dma.vmem_to_hbm [thread:$0]  (%p1837_p5), %s2068_s17, 1024, %s2066_s20, %s2078_s25, %s1762_s16, %s1762_s16, %s1763_s18  }
 0x150 PF: > { %p1662_p1 = scmp.ge.s32.totalorder %s1759_s24, 2  ;;  %s1277_s19 = sand.u32 1, %s1747_s21  }
 0x151   : > { %s1278_s28 = scalar_lea.sflag [#allocation3], %s1277_s19 }
 0x152   : > { %p1659_p2 = pnand %p1662_p1, %p1841_p6 }
 0x154   : > { %1742 = dma.done.wait (!%p1659_p2), %s1278_s28, 1024  }
 0x155   : > { %1744 = vsyncadd (!%p1659_p2), %s1278_s28, 4294966272  ;;  %p16_p3 = scmp.ge.s32.totalorder %s1824_s27, 4   ;;  %s2128_s21 = smov %s1751_s22 }
 0x156   : > { %s2129_s22 = smov %s1755_s23  ;;  %s2130_s23 = smov %s1835_s30 }
 0x157   : > { %s2131_s24 = smov %s1824_s27  ;;  %18 = sbr.rel (!%p16_p3) target bundleno = 3 (0x3), region = 98 }
 0x15e   :  { %1283 = vsyncpa [#allocation3], 1 }
 0x15f   :  { %1285 = vsyncpa [#allocation3 + $0x1], 1 }

// kernel: tpu_custom_call.1
= control target key start
LH: loop header
LB: loop body
LE: loop exit
PB: predicated region body
PF: predicated region fallthrough
CT: control target
= control target key end

     0   :  { %11 = vsyncpa [#allocation3], 0  ;;  %s2119_s0 = inlined_call_operand.vmem [shape: f32[2,9,9,4], index: 0, kind: input, shape index: {}]   ;;  %s2120_s1 = inlined_call_operand.vmem [shape: f32[2,9,9,4], index: 1, kind: input, shape index: {}]   ;;  %s2121_s2 = inlined_call_operand.vmem [shape: f32[2,9,9,4], index: 2, kind: input, shape index: {}]   ;;  %s2122_s3 = inlined_call_operand.vmem [shape: f32[2,9,9,4], index: 3, kind: input, shape index: {}]   ;;  %s2123_s4 = inlined_call_operand.vmem [shape: bf16[9,4,8], index: 4, kind: input, shape index: {}]   ;;  %s2124_s5 = inlined_call_operand.vmem [shape: f32[1,8], index: 5, kind: input, shape index: {}]   ;;  %s2125_s6 = inlined_call_operand.hbm [shape: f32[2,8,8,8], index: 6, kind: output, shape index: {}]  }
   0x1   :  { %13 = vsyncpa [#allocation3 + $0x1], 0  ;;  %s1799_s21 = smov 0   ;;  %s1801_s22 = smov 0  }
   0x2   :  { %s1803_s23 = smov 0   ;;  %s1805_s24 = smov 0  }
   0x3 LB: > { %s1820_s25 = sadd.s32 4294967295, %s1759_s24   ;;  %s1360_s26 = sadd.s32 4294967294, %s1759_s24   ;;  %s1759_s24 = sphi %s1805_s24, %s2131_s24   ;;  %s1755_s23 = sphi %s1803_s23, %s2130_s23   ;;  %s1751_s22 = sphi %s1801_s22, %s2129_s22   ;;  %s1747_s21 = sphi %s1799_s21, %s2128_s21  }
   0x4   : > { %s1824_s27 = sadd.s32 1, %s1759_s24   ;;  %s172_s28 = sadd.s32 1, %s1755_s23 }
   0x5   : > { %s169_s29 = ssub.s32 %s1759_s24, %s1824_s27  ;;  %p182_p0 = scmp.ne.s32.totalorder %s1755_s23, %s1751_s22 }
   0x6   : > { %p170_p1 = scmp.eq.s32.totalorder %s169_s29, 0  ;;  %p183_p2 = scmp.eq.s32.totalorder %s1820_s25, 1 }
   0x7   : > { %p188_p3 = scmp.ne.s32.totalorder %s1751_s22, %s1747_s21  ;;  %p189_p4 = scmp.eq.s32.totalorder %s1360_s26, 1 }
   0x8   : > { %s1835_s30 = scalar_select %p170_p1, %s1755_s23, %s172_s28  }
   0x9   : > { %p1837_p5 = por %p183_p2, %p182_p0  ;;  %p1841_p6 = por %p189_p4, %p188_p3 }
   0xa   : > { %p1363_p7 = scmp.ge.s32.totalorder %s1759_s24, 1  ;;  %p245_p8 = scmp.lt.s32.totalorder %s1759_s24, 3 }
   0xc   : > { %p246_p9 = pnand %p1363_p7, %p245_p8 }
   0xd   : > { %v1369_v0 = vld [vmem:[%s2123_s4 + $0x2] sm:$0x3] (!%p246_p9)  ;;  %vm351_vm0 = vcmask (!%p246_p9), 1041408   ;;  %v1853_v1 = vld [vmem:[%s2123_s4 + $0x8] sm:$0x3] (!%p246_p9)  ;;  %p290_p10 = scmp.lt.s32.totalorder (!%p246_p9), %s1820_s25, 1 }
   0xe   : > { %249 = sbr.rel (%p246_p9) target bundleno = 336 (0x150), region = 44  ;;  %1645 = vmatprep.subr.msk.bf16.mxu1 (!%p246_p9), %vm351_vm0, %v1369_v0  ;;  %1649 = vmatprep.subr.msk.bf16.mxu0 (!%p246_p9), %vm351_vm0, %v1853_v1  ;;  %v353_v2 = vsel (!%p246_p9), %vm351_vm0, %v1369_v0, 0  ;;  %v1862_v3 = vsel (!%p246_p9), %vm351_vm0, %v1853_v1, 0  ;;  %v323_v4 = vld [vmem:[%s2123_s4] sm:$0x3] (!%p246_p9)  ;;  %vm338_vm1 = vcmask (!%p246_p9), 31744  }
   0xf   : > { %1490 = vmatpush3.bf16.msra.mxu1 (!%p246_p9), %v353_v2  ;;  %1530 = vmatpush3.bf16.msra.mxu0 (!%p246_p9), %v1862_v3  ;;  %v1393_v5 = vld [vmem:[%s2123_s4 + $0xa] sm:$0x3] (!%p246_p9)  ;;  %v433_v15 = vsel (!%p246_p9), %vm351_vm0, %v323_v4, 0  ;;  %v1406_v25 = vld [vmem:[%s2123_s4 + $0xc] sm:$0x3] (!%p246_p9)  ;;  %vm1239_vm2 = vcmask (!%p246_p9), 64512  }
  0x10   : > { %1646 = vmatprep.subr.msk.bf16.mxu1 (!%p246_p9), %vm351_vm0, %v323_v4  ;;  %1651 = vmatprep.subr.msk.bf16.mxu0 (!%p246_p9), %vm351_vm0, %v1393_v5  ;;  %v833_v20 = vsel (!%p246_p9), %vm351_vm0, %v1393_v5, 0  ;;  %v1378_v29 = vld [vmem:[%s2123_s4 + $0x4] sm:$0x3] (!%p246_p9)  ;;  %v936_v44 = vsel (!%p246_p9), %vm351_vm0, %v1406_v25, 0  ;;  %v1419_v46 = vld [vmem:[%s2123_s4 + $0xe] sm:$0x3] (!%p246_p9) }
  0x11   : > { %v527_v48 = vsel (!%p246_p9), %vm351_vm0, %v1378_v29, 0  ;;  %v1383_v51 = vld [vmem:[%s2123_s4 + $0x6] sm:$0x3] (!%p246_p9)  ;;  %v1039_v4 = vsel (!%p246_p9), %vm351_vm0, %v1419_v46, 0  ;;  %s1443_s16 = sshll.u32 (!%p246_p9), %s1820_s25, 10  ;;  %s1761_s29 = smov (!%p246_p9), [#allocation2]  }
  0x12   : > { %s2066_s20 = scalar_lea.hbm (!%p246_p9), %s2125_s6, %s1443_s16  ;;  %s1701_s10 = sshll.u32 (!%p246_p9), %s1761_s29, 4  ;;  %s1702_s10 = int_to_ptr.vmem [resolvable:$false] %s1701_s10 }
  0x13   : > { %s1703_s11 = scalar_lea.vmem (!%p246_p9), %s1702_s10, 2048 }
  0x15   : > { %s291_s15 = scalar_select %p290_p10, %s1820_s25, 1 }
  0x17   : > { %s1655_s18 = smul.u32 144, %s291_s15 }
  0x19   : > { %s1877_s26 = scalar_lea.vmem %s2120_s1, %s1655_s18  ;;  %s1886_s9 = scalar_lea.vmem %s2122_s3, %s1655_s18 }
  0x1a   : > { %v324_v6 = vld [vmem:[%s1877_s26] sm:$0xff]  ;;  %v1881_v7 = vld [vmem:[%s1877_s26 + $0x10] sm:$0xff]  ;;  %s1900_s12 = scalar_lea.vmem %s2121_s2, %s1655_s18  ;;  %s1913_s15 = scalar_lea.vmem %s2119_s0, %s1655_s18 }
  0x1b   : > { %v1889_v8 = vld [vmem:[%s1877_s26 + $0x20] sm:$0xff]  ;;  %v332_v9 = vpack.c.bf16 %v1881_v7, %v324_v6  ;;  %v705_v11 = vld [vmem:[%s1886_s9 + $0x10] sm:$0xff] }
  0x1c   : > { %v704_v10 = vld [vmem:[%s1886_s9] sm:$0xff]  ;;  %v1895_v12 = vld [vmem:[%s1877_s26 + $0x30] sm:$0xff] }
  0x1d   : > { %v712_v13 = vpack.c.bf16 %v705_v11, %v704_v10  ;;  %v333_v14 = vpack.c.bf16 %v1895_v12, %v1889_v8  ;;  %v706_v16 = vld [vmem:[%s1886_s9 + $0x20] sm:$0xff]  ;;  %v707_v17 = vld [vmem:[%s1886_s9 + $0x30] sm:$0xff]  ;;  %1491 = vmatprep.mubr.msk.bf16.mxu1 %vm338_vm1, %v332_v9  ;;  %v629_v10 = vsel %vm351_vm0, %v1383_v51, 0 }
  0x1e   : > { %v1908_v18 = vld [vmem:[%s1877_s26 + $0x40] sm:$0xff]  ;;  %v713_v19 = vpack.c.bf16 %v707_v17, %v706_v16  ;;  %v1918_v21 = vld [vmem:[%s1877_s26 + $0x50] sm:$0xff]  ;;  %v1020_v16 = vpack.c.bf16 %v1889_v8, %v1881_v7 }
  0x1f   : > { %1531 = vmatprep.mubr.msk.bf16.mxu0 %vm338_vm1, %v712_v13  ;;  %1492 = vmatmul.mubr.msk.bf16.vlgmr.msra.gmra.mrb[0].mxu1 %vm338_vm1, %v333_v14  ;;  %v334_v22 = vpack.c.bf16 %v1918_v21, %v1908_v18  ;;  %v806_v23 = vld [vmem:[%s1900_s12 + $0x1] sm:$0xff]  ;;  %v807_v24 = vld [vmem:[%s1900_s12 + $0x11] sm:$0xff] }
  0x20   : > { %1500 = vmatpush3.bf16.msra.mxu1 %v433_v15  ;;  %1532 = vmatmul.mubr.msk.bf16.vlgmr.msra.gmra.mrb[0].mxu0 %vm338_vm1, %v713_v19  ;;  %v1931_v26 = vld [vmem:[%s1877_s26 + $0x60] sm:$0xff]  ;;  %v1934_v27 = vld [vmem:[%s1877_s26 + $0x70] sm:$0xff]  ;;  %v814_v28 = vpack.c.bf16 %v807_v24, %v806_v23  ;;  %v1021_v23 = vpack.c.bf16 %v1908_v18, %v1895_v12 }
  0x21   : > { %1540 = vmatpush3.bf16.msra.mxu0 %v833_v20  ;;  %1495 = vmatprep.mubr.msk.bf16.mxu1 %vm338_vm1, %v334_v22  ;;  %v311_v30 = vld [vmem:[%s1913_s15] sm:$0xff]  ;;  %v312_v31 = vld [vmem:[%s1913_s15 + $0x10] sm:$0xff]  ;;  %v335_v32 = vpack.c.bf16 %v1934_v27, %v1931_v26 }
  0x22   : > { %1541 = vmatprep.mubr.msk.bf16.mxu0 %vm338_vm1, %v814_v28  ;;  %1652 = vmatprep.subr.msk.bf16.mxu0 %vm351_vm0, %v1406_v25  ;;  %v319_v33 = vpack.c.bf16 %v312_v31, %v311_v30  ;;  %v808_v34 = vld [vmem:[%s1900_s12 + $0x21] sm:$0xff]  ;;  %v809_v35 = vld [vmem:[%s1900_s12 + $0x31] sm:$0xff] }
  0x23   : > { %1647 = vmatprep.subr.msk.bf16.mxu1 %vm351_vm0, %v1378_v29  ;;  %v810_v36 = vld [vmem:[%s1900_s12 + $0x41] sm:$0xff]  ;;  %v811_v37 = vld [vmem:[%s1900_s12 + $0x51] sm:$0xff]  ;;  %v815_v38 = vpack.c.bf16 %v809_v35, %v808_v34 }
  0x24   : > { %v313_v39 = vld [vmem:[%s1913_s15 + $0x20] sm:$0xff]  ;;  %v314_v40 = vld [vmem:[%s1913_s15 + $0x30] sm:$0xff]  ;;  %v816_v41 = vpack.c.bf16 %v811_v37, %v810_v36 }
  0x25   : > { %v315_v42 = vld [vmem:[%s1913_s15 + $0x40] sm:$0xff]  ;;  %v316_v43 = vld [vmem:[%s1913_s15 + $0x50] sm:$0xff]  ;;  %v320_v45 = vpack.c.bf16 %v314_v40, %v313_v39  ;;  %v917_v55 = vpack.c.bf16 %v313_v39, %v312_v31 }
  0x26   : > { %v321_v47 = vpack.c.bf16 %v316_v43, %v315_v42  ;;  %v812_v49 = vld [vmem:[%s1900_s12 + $0x61] sm:$0xff]  ;;  %v813_v50 = vld [vmem:[%s1900_s12 + $0x71] sm:$0xff]  ;;  %v918_v60 = vpack.c.bf16 %v315_v42, %v314_v40 }
  0x27   : > { %1496 = vmatmul.mubr.msk.bf16.gmra.mrb[4].mxu1 %vm338_vm1, %v335_v32  ;;  %v817_v52 = vpack.c.bf16 %v813_v50, %v812_v49  ;;  %v317_v53 = vld [vmem:[%s1913_s15 + $0x60] sm:$0xff]  ;;  %v318_v54 = vld [vmem:[%s1913_s15 + $0x70] sm:$0xff] }
  0x28   : > { %1501 = vmatprep.mubr.msk.bf16.mxu1 %vm338_vm1, %v319_v33  ;;  %v500_v56 = vld [vmem:[%s1913_s15 + $0x1] sm:$0xff]  ;;  %v1976_v57 = vld [vmem:[%s1913_s15 + $0x11] sm:$0xff]  ;;  %v322_v58 = vpack.c.bf16 %v318_v54, %v317_v53  ;;  %v919_v63 = vpack.c.bf16 %v317_v53, %v316_v43 }
  0x29   : > { %v508_v59 = vpack.c.bf16 %v1976_v57, %v500_v56  ;;  %v502_v61 = vld [vmem:[%s1913_s15 + $0x21] sm:$0xff]  ;;  %v503_v62 = vld [vmem:[%s1913_s15 + $0x31] sm:$0xff] }
  0x2a   : > { %v504_v0 = vld [vmem:[%s1913_s15 + $0x41] sm:$0xff]  ;;  %v505_v2 = vld [vmem:[%s1913_s15 + $0x51] sm:$0xff]  ;;  %v509_v5 = vpack.c.bf16 %v503_v62, %v502_v61  ;;  %v1122_v31 = vpack.c.bf16 %v502_v61, %v1976_v57 }
  0x2b   : > { %v1432_v6 = vld [vmem:[%s2123_s4 + $0x10] sm:$0x3]  ;;  %v510_v9 = vpack.c.bf16 %v505_v2, %v504_v0  ;;  %v1405_v11 = vld [vmem:[%s1913_s15 + $0x80] sm:$0xff] }
  0x2c   : > { %1542 = vmatmul.mubr.msk.bf16.vlgmr.msra.gmra.mrb[0].mxu0 %vm338_vm1, %v815_v38  ;;  %v920_v13 = vpack.c.bf16 %v1405_v11, %v318_v54  ;;  %v506_v14 = vld [vmem:[%s1913_s15 + $0x61] sm:$0xff]  ;;  %v507_v15 = vld [vmem:[%s1913_s15 + $0x71] sm:$0xff]  ;;  %v1141_v28 = vsel %vm351_vm0, %v1432_v6, 0 }
  0x2d   : > { %1550 = vmatpush3.bf16.msra.mxu0 %v936_v44  ;;  %1545 = vmatprep.mubr.msk.bf16.mxu0 %vm338_vm1, %v816_v41  ;;  %v602_v17 = vld [vmem:[%s1900_s12] sm:$0xff]  ;;  %v603_v19 = vld [vmem:[%s1900_s12 + $0x10] sm:$0xff]  ;;  %v511_v20 = vpack.c.bf16 %v507_v15, %v506_v14 }
  0x2e   : > { %1653 = vmatprep.subr.msk.bf16.mxu0 %vm351_vm0, %v1419_v46  ;;  %v610_v22 = vpack.c.bf16 %v603_v19, %v602_v17  ;;  %v604_v7 = vld [vmem:[%s1900_s12 + $0x20] sm:$0xff]  ;;  %v605_v8 = vld [vmem:[%s1900_s12 + $0x30] sm:$0xff] }
  0x2f   : > { %1502 = vmatmul.mubr.msk.bf16.vlgmr.msra.gmra.mrb[0].mxu1 %vm338_vm1, %v320_v45  ;;  %v606_v24 = vld [vmem:[%s1900_s12 + $0x40] sm:$0xff]  ;;  %v607_v25 = vld [vmem:[%s1900_s12 + $0x50] sm:$0xff]  ;;  %v611_v29 = vpack.c.bf16 %v605_v8, %v604_v7 }
  0x30   : > { %1510 = vmatpush3.bf16.msra.mxu1 %v527_v48  ;;  %1505 = vmatprep.mubr.msk.bf16.mxu1 %vm338_vm1, %v321_v47  ;;  %v612_v30 = vpack.c.bf16 %v607_v25, %v606_v24  ;;  %v1418_v12 = vld [vmem:[%s1877_s26 + $0x80] sm:$0xff]  ;;  %v709_v33 = vld [vmem:[%s1886_s9 + $0x50] sm:$0xff]  ;;  %s287_s26 = sand.u32 1, %s1751_s22  }
  0x31   : > { %1648 = vmatprep.subr.msk.bf16.mxu1 %vm351_vm0, %v1383_v51  ;;  %v1023_v18 = vpack.c.bf16 %v1418_v12, %v1934_v27  ;;  %v708_v32 = vld [vmem:[%s1886_s9 + $0x40] sm:$0xff]  ;;  %v1124_v27 = vpack.c.bf16 %v506_v14, %v505_v2  ;;  %v711_v37 = vld [vmem:[%s1886_s9 + $0x70] sm:$0xff]  ;;  %s2078_s25 = scalar_lea.sflag [#allocation3], %s287_s26 }
  0x32   : > { %v714_v35 = vpack.c.bf16 %v709_v33, %v708_v32  ;;  %v710_v36 = vld [vmem:[%s1886_s9 + $0x60] sm:$0xff]  ;;  %s1364_s9 = sshll.u32 %s287_s26, 6 }
  0x33   : > { %v1431_v38 = vld [vmem:[%s1913_s15 + $0x81] sm:$0xff]  ;;  %v715_v39 = vpack.c.bf16 %v711_v37, %v710_v36  ;;  %v1437_v46 = vld [vmem:[%s2124_s5] ss:$0 sm:$0xff]  ;;  %s2049_s15 = scalar_lea.vmem [#allocation2], %s1364_s9 }
  0x34   : > { %1546 = vmatmul.mubr.msk.bf16.gmra.mrb[4].mxu0 %vm338_vm1, %v817_v52  ;;  %v1125_v40 = vpack.c.bf16 %v1431_v38, %v507_v15  ;;  %s1262_s17 = sshll.u32 %s2049_s15, 4  ;;  %s2068_s17 = int_to_ptr.vmem [resolvable:$true] %s1262_s17 }
  0x35   : > { %1551 = vmatprep.mubr.msk.bf16.mxu0 %vm338_vm1, %v917_v55  ;;  %s1697_s28 = scalar_lea.vmem %s2068_s17, 1024  ;;  %p1704_p0 = scmp.lt.s32.totalorder %s2068_s17, %s1702_s10 }
  0x36   : > { %p1698_p11 = scmp.ne.s32.totalorder %s2068_s17, %s1697_s28  ;;  %p1705_p1 = scmp.lt.s32.totalorder %s1703_s11, %s1697_s28 }
  0x37   : > { %1506 = vmatmul.mubr.msk.bf16.gmra.mrb[4].mxu1 %vm338_vm1, %v322_v58 }
  0x38   : > { %1511 = vmatprep.mubr.msk.bf16.mxu1 %vm338_vm1, %v508_v59  ;;  %p1699_p12 = pnand %p1698_p11, %p1837_p5  ;;  %p1706_p2 = por %p1705_p1, %p1704_p0 }
  0x3a   : > { %p1700_p13 = pneg %p1699_p12 }
  0x3c   : > { %1552 = vmatmul.mubr.msk.bf16.vlgmr.msra.gmra.mrb[0].mxu0 %vm338_vm1, %v918_v60  ;;  %p1707_p3 = pnand %p1706_p2, %p1700_p13 }
  0x3d   : > { %1560 = vmatpush3.bf16.msra.mxu0 %v1039_v4  ;;  %1555 = vmatprep.mubr.msk.bf16.mxu0 %vm338_vm1, %v919_v63 }
  0x3e   : > { %1654 = vmatprep.subr.msk.bf16.mxu0 %vm351_vm0, %v1432_v6 }
  0x3f   : > { %1512 = vmatmul.mubr.msk.bf16.vlgmr.msra.gmra.mrb[0].mxu1 %vm338_vm1, %v509_v5 }
  0x40   : > { %1520 = vmatpush3.bf16.msra.mxu1 %v629_v10  ;;  %1515 = vmatprep.mubr.msk.bf16.mxu1 %vm338_vm1, %v510_v9 }
  0x41   : > { %1650 = vmatprep.subr.msk.bf16.mxu1 %vm351_vm0, %v1853_v1  ;;  %v1022_v1 = vpack.c.bf16 %v1931_v26, %v1918_v21  ;;  %v608_v21 = vld [vmem:[%s1900_s12 + $0x60] sm:$0xff]  ;;  %v609_v26 = vld [vmem:[%s1900_s12 + $0x70] sm:$0xff] }
  0x42   : > { %v613_v34 = vpack.c.bf16 %v609_v26, %v608_v21 }
  0x44   : > { %1556 = vmatmul.mubr.msk.bf16.gmra.mrb[4].mxu0 %vm338_vm1, %v920_v13 }
  0x45   : > { %1561 = vmatprep.mubr.msk.bf16.mxu0 %vm338_vm1, %v1020_v16 }
  0x47   : > { %1516 = vmatmul.mubr.msk.bf16.gmra.mrb[4].mxu1 %vm338_vm1, %v511_v20 }
  0x48   : > { %1521 = vmatprep.mubr.msk.bf16.mxu1 %vm338_vm1, %v610_v22 }
  0x4c   : > { %1562 = vmatmul.mubr.msk.bf16.vlgmr.msra.gmra.mrb[0].mxu0 %vm338_vm1, %v1021_v23 }
  0x4d   : > { %1570 = vmatpush3.bf16.msra.mxu0 %v1141_v28  ;;  %1565 = vmatprep.mubr.msk.bf16.mxu0 %vm338_vm1, %v1022_v1 }
  0x4f   : > { %1522 = vmatmul.mubr.msk.bf16.vlgmr.msra.gmra.mrb[0].mxu1 %vm338_vm1, %v611_v29 }
  0x50   : > { %1580 = vmatpush3.bf16.msra.mxu1 %v1862_v3  ;;  %1525 = vmatprep.mubr.msk.bf16.mxu1 %vm338_vm1, %v612_v30  ;;  %v1123_v3 = vpack.c.bf16 %v504_v0, %v503_v62 }
  0x54   : > { %1566 = vmatmul.mubr.msk.bf16.gmra.mrb[4].mxu0 %vm338_vm1, %v1023_v18 }
  0x55   : > { %1571 = vmatprep.mubr.msk.bf16.mxu0 %vm338_vm1, %v1122_v31 }
  0x57   : > { %1526 = vmatmul.mubr.msk.bf16.gmra.mrb[4].mxu1 %vm338_vm1, %v613_v34 }
  0x58   : > { %1535 = vmatprep.mubr.msk.bf16.mxu1 %vm338_vm1, %v714_v35 }
  0x5c   : > { %1572 = vmatmul.mubr.msk.bf16.vlgmr.msra.gmra.mrb[0].mxu0 %vm338_vm1, %v1123_v3 }
  0x5d   : > { %1575 = vmatprep.mubr.msk.bf16.mxu0 %vm338_vm1, %v1124_v27 }
  0x63   : > { %1536 = vmatmul.mubr.msk.bf16.vlgmr.msra.gmra.mrb[4].mxu1 %vm338_vm1, %v715_v39 }
  0x64   : > { %1576 = vmatmul.mubr.msk.bf16.gmra.mrb[4].mxu0 %vm338_vm1, %v1125_v40 }
 0x122   : > { %v1523_v41 = vpop.f32.mrb[0].mxu1 }
 0x123   : > { %v665_v42 = vpop.f32.mrb[1].mxu1 }
 0x124   : > { %v1524_v43 = vpop.f32.mrb[2].mxu1 }
 0x125   : > { %v668_v44 = vpop.f32.mrb[3].mxu1 }
 0x12f   : > { %v1573_v45 = vpop.f32.mrb[0].mxu0 }
 0x130   : > { %v1581_v47 = vadd.f32 %v1573_v45, %v1523_v41  ;;  %v1177_v48 = vpop.f32.mrb[1].mxu0 }
 0x131   : > { %v1582_v49 = vadd.f32 %v1177_v48, %v665_v42  ;;  %v1574_v50 = vpop.f32.mrb[2].mxu0 }
 0x132   : > { %v1225_v51 = vadd.f32 %v1581_v47, %v1437_v46  ;;  %v1583_v52 = vadd.f32 %v1574_v50, %v1524_v43  ;;  %v1180_v53 = vpop.f32.mrb[3].mxu0 }
 0x133   : > { %v1223_v54 = vadd.f32 %v1582_v49, %v1437_v46  ;;  %v1584_v55 = vadd.f32 %v1180_v53, %v668_v44 }
 0x134   : > { %v1233_v56 = vmax.f32 %v1225_v51, 0.0  ;;  %v1226_v57 = vadd.f32 %v1583_v52, %v1437_v46 }
 0x135   : > { %v1231_v58 = vmax.f32 %v1223_v54, 0.0  ;;  %v1224_v59 = vadd.f32 %v1584_v55, %v1437_v46 }
 0x136   : > { %1242 = vst.msk [vmem:[%s2049_s15 + $0x10] sm:$0xff] %vm1239_vm2, %v1233_v56  ;;  %v1234_v60 = vmax.f32 %v1226_v57, 0.0  ;;  %v1537_v61 = vpop.f32.mrb[4].mxu1 }
 0x137   : > { %1240 = vst.msk [vmem:[%s2049_s15] sm:$0xff] %vm1239_vm2, %v1231_v58  ;;  %v1232_v62 = vmax.f32 %v1224_v59, 0.0  ;;  %v1577_v63 = vpop.f32.mrb[4].mxu0  ;;  %v783_v0 = vpop.f32.mrb[5].mxu1 }
 0x138   : > { %1243 = vst.msk [vmem:[%s2049_s15 + $0x18] sm:$0xff] %vm1239_vm2, %v1234_v60  ;;  %v1585_v2 = vadd.f32 %v1577_v63, %v1537_v61  ;;  %v1193_v4 = vpop.f32.mrb[5].mxu0  ;;  %v1538_v5 = vpop.f32.mrb[6].mxu1 }
 0x139   : > { %1241 = vst.msk [vmem:[%s2049_s15 + $0x8] sm:$0xff] %vm1239_vm2, %v1232_v62  ;;  %v1586_v6 = vadd.f32 %v1193_v4, %v783_v0  ;;  %v1578_v9 = vpop.f32.mrb[6].mxu0  ;;  %v786_v10 = vpop.f32.mrb[7].mxu1 }
 0x13a   : > { %v1229_v11 = vadd.f32 %v1585_v2, %v1437_v46  ;;  %v1587_v13 = vadd.f32 %v1578_v9, %v1538_v5  ;;  %v1196_v14 = vpop.f32.mrb[7].mxu0 }
 0x13b   : > { %v1227_v15 = vadd.f32 %v1586_v6, %v1437_v46  ;;  %v1588_v16 = vadd.f32 %v1196_v14, %v786_v10 }
 0x13c   : > { %v1237_v17 = vmax.f32 %v1229_v11, 0.0  ;;  %v1230_v19 = vadd.f32 %v1587_v13, %v1437_v46 }
 0x13d   : > { %v1235_v20 = vmax.f32 %v1227_v15, 0.0  ;;  %v1228_v22 = vadd.f32 %v1588_v16, %v1437_v46 }
 0x13e   : > { %1246 = vst.msk [vmem:[%s2049_s15 + $0x30] sm:$0xff] %vm1239_vm2, %v1237_v17  ;;  %v1238_v23 = vmax.f32 %v1230_v19, 0.0 }
 0x13f   : > { %1244 = vst.msk [vmem:[%s2049_s15 + $0x20] sm:$0xff] %vm1239_vm2, %v1235_v20  ;;  %v1236_v7 = vmax.f32 %v1228_v22, 0.0 }
 0x140   : > { %1247 = vst.msk [vmem:[%s2049_s15 + $0x38] sm:$0xff] %vm1239_vm2, %v1238_v23 }
 0x141   : > { %1245 = vst.msk [vmem:[%s2049_s15 + $0x28] sm:$0xff] %vm1239_vm2, %v1236_v7 }
 0x142   : > { %1710 = shalt.err (!%p1707_p3)
}
 0x143   : > { %s1711_s13 = scalar_lea.hbm %s2066_s20, 1024  ;;  %s1715_s14 = scalar_lea.hbm %s2125_s6, 2048 }
 0x144   : > { %p1712_p4 = scmp.ne.s32.totalorder %s2066_s20, %s1711_s13  ;;  %p1716_p9 = scmp.lt.u32.totalorder %s2066_s20, %s2125_s6 }
 0x145   : > { %p1717_p10 = scmp.lt.u32.totalorder %s1715_s14, %s1711_s13  ;;  %p1719_p12 = scmp.lt.u32.totalorder %s1711_s13, %s2066_s20 }
 0x146   : > { %p1713_p7 = pnand %p1712_p4, %p1837_p5 }
 0x147   : > { %p1718_p11 = por %p1717_p10, %p1716_p9 }
 0x148   : > { %p1714_p8 = pneg %p1713_p7 }
 0x149   : > { %p1720_p13 = por %p1719_p12, %p1718_p11 }
 0x14b   : > { %p1721_p0 = pnand %p1720_p13, %p1714_p8 }
 0x14d   : > { %1724 = shalt.err (!%p1721_p0)
}
 0x14e   : > { %s1762_s16 = smov 128   ;;  %s1763_s18 = smov 8  }
 0x14f   : > { %1656 = dma.vmem_to_hbm [thread:$0]  (%p1837_p5), %s2068_s17, 1024, %s2066_s20, %s2078_s25, %s1762_s16, %s1762_s16, %s1763_s18  }
 0x150 PF: > { %p1662_p1 = scmp.ge.s32.totalorder %s1759_s24, 2  ;;  %s1277_s19 = sand.u32 1, %s1747_s21  }
 0x151   : > { %s1278_s28 = scalar_lea.sflag [#allocation3], %s1277_s19 }
 0x152   : > { %p1659_p2 = pnand %p1662_p1, %p1841_p6 }
 0x154   : > { %1742 = dma.done.wait (!%p1659_p2), %s1278_s28, 1024  }
 0x155   : > { %1744 = vsyncadd (!%p1659_p2), %s1278_s28, 4294966272  ;;  %p16_p3 = scmp.ge.s32.totalorder %s1824_s27, 4   ;;  %s2128_s21 = smov %s1751_s22 }
 0x156   : > { %s2129_s22 = smov %s1755_s23  ;;  %s2130_s23 = smov %s1835_s30 }
 0x157   : > { %s2131_s24 = smov %s1824_s27  ;;  %18 = sbr.rel (!%p16_p3) target bundleno = 3 (0x3), region = 98 }
 0x15e   :  { %1283 = vsyncpa [#allocation3], 1 }
 0x15f   :  { %1285 = vsyncpa [#allocation3 + $0x1], 1 }

</bundles_post_ra>
